<compile_context>
chip_gen: v5e
topology: v5e:2x2
jax: 0.10.0
libtpu: 0.0.40
codegen_flags: <defaults>
</compile_context>

<pallas_src>
import jax
import jax.numpy as jnp
from jax.experimental import pallas as pl
from jax.experimental.pallas import tpu as pltpu


# ----------------------------- Sizes (toy, consistent with the module) -----------------------------

NUM_CLASSES = 5        # FastRCNNPredictor(num_classes)
B = 2                  # batch (= number of ROIs here: one ROI per image)
CIN = 4                # input channels
H = W = 14             # 14x14 feature map -> 2x2 avg pool -> 7x7 ROI grid
CF = 8                 # real backbone-stem output channels
R = 32                 # TwoMLPHead representation size (cls_score.in_features)

COUT_PAD = 128         # conv output channels padded to a full lane width
R_PAD = 128            # representation padded to a full lane width
P_PAD = 128            # fused predictor width (num_classes + 4*num_classes = 25) padded to 128

POOL_HW = 7            # 7x7 pooled grid (one ROI per image)
POOL_PAD = 56          # 49 pooled positions padded up to a multiple of 8 sublanes
D_PAD = POOL_PAD * COUT_PAD  # flattened roi-feature width fed to fc6 (7168)


# ----------------------------- Pallas kernels -----------------------------

def conv_pool_kernel(x_ref, w_ref, b_ref, p_ref, o_ref):
    """Fused 3x3 conv + bias + ReLU + 2x2 avg pool for one image.

    x_ref: [1, H*W, 9*Cin] bf16   im2col patches (taps packed into lanes)
    w_ref: [9*Cin, COUT_PAD] bf16 conv weight, one K=9*Cin contraction
    b_ref: [1, COUT_PAD] f32
    p_ref: [POOL_PAD, H*W] f32    pooling matrix (rows >= 49 are zero)
    o_ref: [1, POOL_PAD, COUT_PAD] bf16  pooled features, lane-dense
    """
    feat = jnp.dot(x_ref[0], w_ref[...], preferred_element_type=jnp.float32) + b_ref[...]
    feat = jnp.maximum(feat, 0.0)                                            # [H*W, COUT_PAD] f32
    pooled = jnp.dot(p_ref[...], feat, preferred_element_type=jnp.float32)   # [POOL_PAD, COUT_PAD]
    o_ref[0] = pooled.astype(o_ref.dtype)


def box_head_kernel(x_ref, w6_ref, b6_ref, w7_ref, b7_ref, wp_ref, bp_ref, o_ref):
    """Fused TwoMLPHead + FastRCNNPredictor for one tile of rois.

    x: [tile, D_PAD] bf16 -> h = relu(x@W6+b6); h = relu(h@W7+b7)
    o: [tile, P_PAD] f32 = h @ [Wc | Wb] + [bc | bb]   (split into scores / bbox in the wrapper)
    """
    h = jnp.dot(x_ref[...], w6_ref[...], preferred_element_type=jnp.float32) + b6_ref[...]
    h = jnp.maximum(h, 0.0).astype(jnp.bfloat16)
    h = jnp.dot(h, w7_ref[...], preferred_element_type=jnp.float32) + b7_ref[...]
    h = jnp.maximum(h, 0.0).astype(jnp.bfloat16)
    o_ref[...] = jnp.dot(h, wp_ref[...], preferred_element_type=jnp.float32) + bp_ref[...]


# ----------------------------- Wrappers -----------------------------

def conv3x3_relu_pool(patches, conv_w, conv_b, pool_mat):
    """patches: [B, H*W, 9*Cin] bf16 -> pooled features [B, POOL_PAD, COUT_PAD] bf16."""
    b, m, k = patches.shape
    cost = pl.CostEstimate(
        flops=2 * b * m * k * COUT_PAD + 2 * b * POOL_PAD * m * COUT_PAD,
        transcendentals=0,
        bytes_accessed=patches.size * 2 + conv_w.size * 2 + conv_b.size * 4
        + pool_mat.size * 4 + b * POOL_PAD * COUT_PAD * 2,
    )
    return pl.pallas_call(
        conv_pool_kernel,
        out_shape=jax.ShapeDtypeStruct((b, POOL_PAD, COUT_PAD), jnp.bfloat16),
        grid=(b,),
        in_specs=[
            pl.BlockSpec((1, m, k), lambda i: (i, 0, 0)),
            pl.BlockSpec((k, COUT_PAD), lambda i: (0, 0)),       # weights resident in VMEM
            pl.BlockSpec((1, COUT_PAD), lambda i: (0, 0)),
            pl.BlockSpec((POOL_PAD, m), lambda i: (0, 0)),
        ],
        out_specs=pl.BlockSpec((1, POOL_PAD, COUT_PAD), lambda i: (i, 0, 0)),
        compiler_params=pltpu.CompilerParams(
            dimension_semantics=("parallel",),                   # 2 steps -> both TCs on v7x
            vmem_limit_bytes=32 * 1024 * 1024,
        ),
        cost_estimate=cost,
    )(patches, conv_w, conv_b, pool_mat)


def box_head(roi_feats, kp, *, roi_tile=8):
    """roi_feats: [N, D_PAD] bf16 -> fused head outputs [N_pad, P_PAD] f32.

    For the toy roi count this runs a single grid step (grid=(1,)).  At production roi counts
    (512-1000) raise roi_tile toward the MXU M width: 128 on v5e, 256 on v6e/v7x.
    """
    n, dp = roi_feats.shape
    n_pad = ((n + roi_tile - 1) // roi_tile) * roi_tile
    x = jnp.pad(roi_feats, ((0, n_pad - n), (0, 0)))
    rp = kp["w6"].shape[-1]
    pp = kp["wp"].shape[-1]
    # TODO(synk): at production sizes (D=12544, R=1024) K-tile the D axis with an f32 accumulator
    #             scratch on v7x (64 MiB VMEM); keep w6 resident + single-buffered on v5e/v6e.
    cost = pl.CostEstimate(
        flops=2 * n_pad * (dp * rp + rp * rp + rp * pp),
        transcendentals=0,
        bytes_accessed=(x.size + kp["w6"].size + kp["w7"].size + kp["wp"].size) * 2
        + (kp["b6"].size + kp["b7"].size + kp["bp"].size) * 4
        + n_pad * pp * 4,
    )
    return pl.pallas_call(
        box_head_kernel,
        out_shape=jax.ShapeDtypeStruct((n_pad, pp), jnp.float32),
        grid=(n_pad // roi_tile,),
        in_specs=[
            pl.BlockSpec((roi_tile, dp), lambda i: (i, 0)),
            pl.BlockSpec((dp, rp), lambda i: (0, 0)),            # weights stay resident in VMEM
            pl.BlockSpec((1, rp), lambda i: (0, 0)),
            pl.BlockSpec((rp, rp), lambda i: (0, 0)),
            pl.BlockSpec((1, rp), lambda i: (0, 0)),
            pl.BlockSpec((rp, pp), lambda i: (0, 0)),
            pl.BlockSpec((1, pp), lambda i: (0, 0)),
        ],
        out_specs=pl.BlockSpec((roi_tile, pp), lambda i: (i, 0)),
        compiler_params=pltpu.CompilerParams(
            dimension_semantics=("parallel",),
            vmem_limit_bytes=32 * 1024 * 1024,
        ),
        cost_estimate=cost,
    )(x, kp["w6"], kp["b6"], kp["w7"], kp["b7"], kp["wp"], kp["bp"])


def faster_rcnn_forward(x_nchw, kp):
    """Synthetic FasterRCNN.forward (inference path, y=None)."""
    x = jnp.transpose(x_nchw, (0, 2, 3, 1)).astype(jnp.float32)              # NCHW -> NHWC
    b, h, w, cin = x.shape
    xp = jnp.pad(x, ((0, 0), (1, 1), (1, 1), (0, 0)))
    # im2col: 3x3 taps packed into lanes ([rows, 9*Cin]); bf16 cast done once, host-side.
    cols = [xp[:, di:di + h, dj:dj + w, :] for di in range(3) for dj in range(3)]
    patches = jnp.concatenate(cols, axis=-1).reshape(b, h * w, 9 * cin).astype(jnp.bfloat16)

    pooled = conv3x3_relu_pool(patches, kp["conv_w"], kp["conv_b"], kp["pool"])  # [B,56,128] bf16
    roi_feats = pooled.reshape(b, D_PAD)                                     # contiguous reshape

    out = box_head(roi_feats, kp)                                            # [N_pad, 128]
    scores = out[:b, :NUM_CLASSES]
    bbox_deltas = out[:b, NUM_CLASSES:5 * NUM_CLASSES]
    return scores, bbox_deltas


# ----------------------------- Offline weight preparation -----------------------------

def prepare_params(p):
    """Pad / reorder the original-layout weights into the lane-dense kernel layout (done once)."""
    f32, bf16 = jnp.float32, jnp.bfloat16
    num_classes = p["wc"].shape[-1]
    cf = p["conv_w"].shape[-1]
    r = p["w6"].shape[-1]

    # conv weight: single K=9*Cin contraction, output channels padded to 128 lanes
    conv_w_p = jnp.zeros((9 * CIN, COUT_PAD), f32).at[:, :cf].set(p["conv_w"]).astype(bf16)
    conv_b_p = jnp.zeros((1, COUT_PAD), f32).at[:, :cf].set(p["conv_b"])

    # 2x2 average-pool matrix [POOL_PAD, H*W]; rows 49..55 are zero padding.
    pi, pj = jnp.meshgrid(jnp.arange(POOL_HW), jnp.arange(POOL_HW), indexing="ij")
    base = (2 * pi * W + 2 * pj).reshape(-1)                                 # [49]
    rows = jnp.arange(POOL_HW * POOL_HW)
    pool = jnp.zeros((POOL_PAD, H * W), f32)
    for off in (0, 1, W, W + 1):
        pool = pool.at[rows, base + off].add(0.25)

    # fc6 rows: original order is torch.flatten of NCHW roi features, i.e. (c, i, j).
    # Kernel roi features are flattened (pooled_pos, c_pad) with 7 zero padding positions.
    w6 = p["w6"].reshape(cf, POOL_HW, POOL_HW, r).transpose(1, 2, 0, 3)      # (i, j, c, r)
    w6_p = jnp.zeros((POOL_HW, POOL_HW, COUT_PAD, R_PAD), f32).at[:, :, :cf, :r].set(w6)
    w6_p = w6_p.reshape(POOL_HW * POOL_HW * COUT_PAD, R_PAD)
    w6_p = jnp.pad(w6_p, ((0, D_PAD - POOL_HW * POOL_HW * COUT_PAD), (0, 0))).astype(bf16)
    b6_p = jnp.zeros((1, R_PAD), f32).at[:, :r].set(p["b6"])

    w7_p = jnp.zeros((R_PAD, R_PAD), f32).at[:r, :r].set(p["w7"]).astype(bf16)
    b7_p = jnp.zeros((1, R_PAD), f32).at[:, :r].set(p["b7"])

    # fused predictor: [cls_score | bbox_pred] in one lane-dense matmul
    wp_p = jnp.zeros((R_PAD, P_PAD), f32)
    wp_p = wp_p.at[:r, :num_classes].set(p["wc"])
    wp_p = wp_p.at[:r, num_classes:5 * num_classes].set(p["wb"])
    bp_p = jnp.zeros((1, P_PAD), f32)
    bp_p = bp_p.at[:, :num_classes].set(p["bc"])
    bp_p = bp_p.at[:, num_classes:5 * num_classes].set(p["bb"])

    return {
        "conv_w": conv_w_p, "conv_b": conv_b_p, "pool": pool,
        "w6": w6_p, "b6": b6_p,
        "w7": w7_p, "b7": b7_p,
        "wp": wp_p.astype(bf16), "bp": bp_p,
    }


# ----------------------------- Reference (plain JAX, original-layout weights) -----------------------------

def reference_forward(x_nchw, p):
    bf16, f32 = jnp.bfloat16, jnp.float32
    x = jnp.transpose(x_nchw, (0, 2, 3, 1)).astype(f32)
    b, h, w, cin = x.shape
    xp = jnp.pad(x, ((0, 0), (1, 1), (1, 1), (0, 0)))
    cols = [xp[:, di:di + h, dj:dj + w, :] for di in range(3) for dj in range(3)]
    patches = jnp.concatenate(cols, axis=-1).reshape(b * h * w, 9 * cin).astype(bf16)
    feat = jnp.dot(patches, p["conv_w"].astype(bf16), preferred_element_type=f32) + p["conv_b"]
    cf = p["conv_w"].shape[-1]
    feat = jnp.maximum(feat, 0.0).reshape(b, h, w, cf)
    pooled = feat.reshape(b, h // 2, 2, w // 2, 2, cf).mean(axis=(2, 4))
    rf = jnp.transpose(pooled, (0, 3, 1, 2)).reshape(b, cf * (h // 2) * (w // 2)).astype(bf16)
    hdn = jnp.maximum(jnp.dot(rf, p["w6"].astype(bf16), preferred_element_type=f32) + p["b6"], 0.0)
    hdn = jnp.maximum(
        jnp.dot(hdn.astype(bf16), p["w7"].astype(bf16), preferred_element_type=f32) + p["b7"], 0.0)
    hb = hdn.astype(bf16)
    scores = jnp.dot(hb, p["wc"].astype(bf16), preferred_element_type=f32) + p["bc"]
    bbox = jnp.dot(hb, p["wb"].astype(bf16), preferred_element_type=f32) + p["bb"]
    return scores, bbox


# ----------------------------- Main -----------------------------

if __name__ == "__main__":
    d = CF * POOL_HW * POOL_HW
    key = jax.random.PRNGKey(0)
    ks = jax.random.split(key, 11)

    params = {
        "conv_w": 0.1 * jax.random.normal(ks[0], (9 * CIN, CF), jnp.float32),
        "conv_b": 0.1 * jax.random.normal(ks[1], (1, CF), jnp.float32),
        "w6": 0.1 * jax.random.normal(ks[2], (d, R), jnp.float32),
        "b6": 0.1 * jax.random.normal(ks[3], (1, R), jnp.float32),
        "w7": 0.1 * jax.random.normal(ks[4], (R, R), jnp.float32),
        "b7": 0.1 * jax.random.normal(ks[5], (1, R), jnp.float32),
        "wc": 0.1 * jax.random.normal(ks[6], (R, NUM_CLASSES), jnp.float32),
        "bc": 0.1 * jax.random.normal(ks[7], (1, NUM_CLASSES), jnp.float32),
        "wb": 0.1 * jax.random.normal(ks[8], (R, 4 * NUM_CLASSES), jnp.float32),
        "bb": 0.1 * jax.random.normal(ks[9], (1, 4 * NUM_CLASSES), jnp.float32),
    }
    kparams = prepare_params(params)

    x = jax.random.normal(ks[10], (B, CIN, H, W), jnp.float32)

    fwd = jax.jit(faster_rcnn_forward)
    scores, bbox = jax.block_until_ready(fwd(x, kparams))
    ref_scores, ref_bbox = reference_forward(x, params)

    assert scores.shape == (B, NUM_CLASSES)
    assert bbox.shape == (B, 4 * NUM_CLASSES)
    # bf16 matmul operands (f32 accumulation) -> looser tolerance than a pure-f32 comparison.
    assert jnp.allclose(scores, ref_scores, atol=1e-2, rtol=1e-2), (
        f"scores max err {jnp.max(jnp.abs(scores - ref_scores))}")
    assert jnp.allclose(bbox, ref_bbox, atol=1e-2, rtol=1e-2), (
        f"bbox max err {jnp.max(jnp.abs(bbox - ref_bbox))}")

    print("KERNEL_OK")
</pallas_src>

<mosaic_0001>
module attributes {stable_mosaic.version = 11 : i64} {
  func.func @conv_pool_kernel(%arg0: i32, %arg1: memref<1x196x36xbf16, #tpu.memory_space<vmem>>, %arg2: memref<36x128xbf16, #tpu.memory_space<vmem>>, %arg3: memref<1x128xf32, #tpu.memory_space<vmem>>, %arg4: memref<56x196xf32, #tpu.memory_space<vmem>>, %arg5: memref<1x56x128xbf16, #tpu.memory_space<vmem>>) attributes {dimension_semantics = [#tpu.dimension_semantics<parallel>], iteration_bounds = array<i64: 2>, scalar_prefetch = 0 : i64, scratch_operands = 0 : i64, tpu.core_type = #tpu.core_type<tc>, window_params = [{transform_indices = @transform_0, window_bounds = array<i64: 1, 196, 36>}, {pipeline_mode = #tpu.pipeline_mode<synchronous>, transform_indices = @transform_1, window_bounds = array<i64: 36, 128>}, {pipeline_mode = #tpu.pipeline_mode<synchronous>, transform_indices = @transform_2, window_bounds = array<i64: 1, 128>}, {pipeline_mode = #tpu.pipeline_mode<synchronous>, transform_indices = @transform_3, window_bounds = array<i64: 56, 196>}, {transform_indices = @transform_4, window_bounds = array<i64: 1, 56, 128>}]} {
    %c0 = arith.constant 0 : index
    %c0_0 = arith.constant 0 : index
    %c0_1 = arith.constant 0 : index
    %0 = vector.load %arg1[%c0, %c0_0, %c0_1] : memref<1x196x36xbf16, #tpu.memory_space<vmem>>, vector<1x196x36xbf16>
    %1 = vector.shape_cast %0 : vector<1x196x36xbf16> to vector<196x36xbf16>
    %c0_2 = arith.constant 0 : index
    %c0_3 = arith.constant 0 : index
    %2 = vector.load %arg2[%c0_2, %c0_3] : memref<36x128xbf16, #tpu.memory_space<vmem>>, vector<36x128xbf16>
    %cst = arith.constant dense<0.000000e+00> : vector<196x128xf32>
    %3 = tpu.matmul %1, %2, %cst {dimension_numbers = #tpu.dot_dimension_numbers<[1], [0], [0], [1], [0, 0, 1, 1], [], []>} : vector<196x36xbf16>, vector<36x128xbf16>, vector<196x128xf32> -> vector<196x128xf32>
    %c0_4 = arith.constant 0 : index
    %c0_5 = arith.constant 0 : index
    %4 = vector.load %arg3[%c0_4, %c0_5] : memref<1x128xf32, #tpu.memory_space<vmem>>, vector<1x128xf32>
    %5 = vector.broadcast %4 : vector<1x128xf32> to vector<196x128xf32>
    %6 = arith.addf %3, %5 : vector<196x128xf32>
    %cst_6 = arith.constant 0.000000e+00 : f32
    %7 = vector.broadcast %cst_6 : f32 to vector<196x128xf32>
    %8 = arith.maximumf %6, %7 : vector<196x128xf32>
    %c0_7 = arith.constant 0 : index
    %c0_8 = arith.constant 0 : index
    %9 = vector.load %arg4[%c0_7, %c0_8] : memref<56x196xf32, #tpu.memory_space<vmem>>, vector<56x196xf32>
    %cst_9 = arith.constant dense<0.000000e+00> : vector<56x128xf32>
    %10 = tpu.matmul %9, %8, %cst_9 {dimension_numbers = #tpu.dot_dimension_numbers<[1], [0], [0], [1], [0, 0, 1, 1], [], []>} : vector<56x196xf32>, vector<196x128xf32>, vector<56x128xf32> -> vector<56x128xf32>
    %11 = arith.truncf %10 : vector<56x128xf32> to vector<56x128xbf16>
    %c0_10 = arith.constant 0 : index
    %c0_11 = arith.constant 0 : index
    %c0_12 = arith.constant 0 : index
    %12 = vector.load %arg5[%c0_10, %c0_11, %c0_12] : memref<1x56x128xbf16, #tpu.memory_space<vmem>>, vector<1x56x128xbf16>
    %13 = vector.shape_cast %12 : vector<1x56x128xbf16> to vector<56x128xbf16>
    %14 = vector.shape_cast %11 : vector<56x128xbf16> to vector<1x56x128xbf16>
    tpu.vector_store %arg5[%c0_10, %c0_11, %c0_12], %14 {strides = array<i32>} : memref<1x56x128xbf16, #tpu.memory_space<vmem>>, vector<1x56x128xbf16>,
    return
  }
  func.func @transform_0(%arg0: i32) -> (i32, i32, i32) {
    %c0_i32 = arith.constant 0 : i32
    %c0_i32_0 = arith.constant 0 : i32
    %c0_i32_1 = arith.constant 0 : i32
    return %arg0, %c0_i32, %c0_i32_0 : i32, i32, i32
  }
  func.func @transform_1(%arg0: i32) -> (i32, i32) {
    %c0_i32 = arith.constant 0 : i32
    %c0_i32_0 = arith.constant 0 : i32
    %c0_i32_1 = arith.constant 0 : i32
    return %c0_i32, %c0_i32_0 : i32, i32
  }
  func.func @transform_2(%arg0: i32) -> (i32, i32) {
    %c0_i32 = arith.constant 0 : i32
    %c0_i32_0 = arith.constant 0 : i32
    %c0_i32_1 = arith.constant 0 : i32
    return %c0_i32, %c0_i32_0 : i32, i32
  }
  func.func @transform_3(%arg0: i32) -> (i32, i32) {
    %c0_i32 = arith.constant 0 : i32
    %c0_i32_0 = arith.constant 0 : i32
    %c0_i32_1 = arith.constant 0 : i32
    return %c0_i32, %c0_i32_0 : i32, i32
  }
  func.func @transform_4(%arg0: i32) -> (i32, i32, i32) {
    %c0_i32 = arith.constant 0 : i32
    %c0_i32_0 = arith.constant 0 : i32
    %c0_i32_1 = arith.constant 0 : i32
    return %arg0, %c0_i32, %c0_i32_0 : i32, i32, i32
  }
}

module attributes {stable_mosaic.version = 11 : i64} {
  func.func @box_head_kernel(%arg0: i32, %arg1: memref<8x7168xbf16, #tpu.memory_space<vmem>>, %arg2: memref<7168x128xbf16, #tpu.memory_space<vmem>>, %arg3: memref<1x128xf32, #tpu.memory_space<vmem>>, %arg4: memref<128x128xbf16, #tpu.memory_space<vmem>>, %arg5: memref<1x128xf32, #tpu.memory_space<vmem>>, %arg6: memref<128x128xbf16, #tpu.memory_space<vmem>>, %arg7: memref<1x128xf32, #tpu.memory_space<vmem>>, %arg8: memref<8x128xf32, #tpu.memory_space<vmem>>) attributes {dimension_semantics = [#tpu.dimension_semantics<parallel>], iteration_bounds = array<i64: 1>, scalar_prefetch = 0 : i64, scratch_operands = 0 : i64, tpu.core_type = #tpu.core_type<tc>, window_params = [{transform_indices = @transform_0, window_bounds = array<i64: 8, 7168>}, {pipeline_mode = #tpu.pipeline_mode<synchronous>, transform_indices = @transform_1, window_bounds = array<i64: 7168, 128>}, {pipeline_mode = #tpu.pipeline_mode<synchronous>, transform_indices = @transform_2, window_bounds = array<i64: 1, 128>}, {pipeline_mode = #tpu.pipeline_mode<synchronous>, transform_indices = @transform_3, window_bounds = array<i64: 128, 128>}, {pipeline_mode = #tpu.pipeline_mode<synchronous>, transform_indices = @transform_4, window_bounds = array<i64: 1, 128>}, {pipeline_mode = #tpu.pipeline_mode<synchronous>, transform_indices = @transform_5, window_bounds = array<i64: 128, 128>}, {pipeline_mode = #tpu.pipeline_mode<synchronous>, transform_indices = @transform_6, window_bounds = array<i64: 1, 128>}, {transform_indices = @transform_7, window_bounds = array<i64: 8, 128>}]} {
    %c0 = arith.constant 0 : index
    %c0_0 = arith.constant 0 : index
    %0 = vector.load %arg1[%c0, %c0_0] : memref<8x7168xbf16, #tpu.memory_space<vmem>>, vector<8x7168xbf16>
    %c0_1 = arith.constant 0 : index
    %c0_2 = arith.constant 0 : index
    %1 = vector.load %arg2[%c0_1, %c0_2] : memref<7168x128xbf16, #tpu.memory_space<vmem>>, vector<7168x128xbf16>
    %cst = arith.constant dense<0.000000e+00> : vector<8x128xf32>
    %2 = tpu.matmul %0, %1, %cst {dimension_numbers = #tpu.dot_dimension_numbers<[1], [0], [0], [1], [0, 0, 1, 1], [], []>} : vector<8x7168xbf16>, vector<7168x128xbf16>, vector<8x128xf32> -> vector<8x128xf32>
    %c0_3 = arith.constant 0 : index
    %c0_4 = arith.constant 0 : index
    %3 = vector.load %arg3[%c0_3, %c0_4] : memref<1x128xf32, #tpu.memory_space<vmem>>, vector<1x128xf32>
    %4 = vector.broadcast %3 : vector<1x128xf32> to vector<8x128xf32>
    %5 = arith.addf %2, %4 : vector<8x128xf32>
    %cst_5 = arith.constant 0.000000e+00 : f32
    %6 = vector.broadcast %cst_5 : f32 to vector<8x128xf32>
    %7 = arith.maximumf %5, %6 : vector<8x128xf32>
    %8 = arith.truncf %7 : vector<8x128xf32> to vector<8x128xbf16>
    %c0_6 = arith.constant 0 : index
    %c0_7 = arith.constant 0 : index
    %9 = vector.load %arg4[%c0_6, %c0_7] : memref<128x128xbf16, #tpu.memory_space<vmem>>, vector<128x128xbf16>
    %cst_8 = arith.constant dense<0.000000e+00> : vector<8x128xf32>
    %10 = tpu.matmul %8, %9, %cst_8 {dimension_numbers = #tpu.dot_dimension_numbers<[1], [0], [0], [1], [0, 0, 1, 1], [], []>} : vector<8x128xbf16>, vector<128x128xbf16>, vector<8x128xf32> -> vector<8x128xf32>
    %c0_9 = arith.constant 0 : index
    %c0_10 = arith.constant 0 : index
    %11 = vector.load %arg5[%c0_9, %c0_10] : memref<1x128xf32, #tpu.memory_space<vmem>>, vector<1x128xf32>
    %12 = vector.broadcast %11 : vector<1x128xf32> to vector<8x128xf32>
    %13 = arith.addf %10, %12 : vector<8x128xf32>
    %cst_11 = arith.constant 0.000000e+00 : f32
    %14 = vector.broadcast %cst_11 : f32 to vector<8x128xf32>
    %15 = arith.maximumf %13, %14 : vector<8x128xf32>
    %16 = arith.truncf %15 : vector<8x128xf32> to vector<8x128xbf16>
    %c0_12 = arith.constant 0 : index
    %c0_13 = arith.constant 0 : index
    %17 = vector.load %arg6[%c0_12, %c0_13] : memref<128x128xbf16, #tpu.memory_space<vmem>>, vector<128x128xbf16>
    %cst_14 = arith.constant dense<0.000000e+00> : vector<8x128xf32>
    %18 = tpu.matmul %16, %17, %cst_14 {dimension_numbers = #tpu.dot_dimension_numbers<[1], [0], [0], [1], [0, 0, 1, 1], [], []>} : vector<8x128xbf16>, vector<128x128xbf16>, vector<8x128xf32> -> vector<8x128xf32>
    %c0_15 = arith.constant 0 : index
    %c0_16 = arith.constant 0 : index
    %19 = vector.load %arg7[%c0_15, %c0_16] : memref<1x128xf32, #tpu.memory_space<vmem>>, vector<1x128xf32>
    %20 = vector.broadcast %19 : vector<1x128xf32> to vector<8x128xf32>
    %21 = arith.addf %18, %20 : vector<8x128xf32>
    %c0_17 = arith.constant 0 : index
    %c0_18 = arith.constant 0 : index
    %22 = vector.load %arg8[%c0_17, %c0_18] : memref<8x128xf32, #tpu.memory_space<vmem>>, vector<8x128xf32>
    tpu.vector_store %arg8[%c0_17, %c0_18], %21 {strides = array<i32>} : memref<8x128xf32, #tpu.memory_space<vmem>>, vector<8x128xf32>,
    return
  }
  func.func @transform_0(%arg0: i32) -> (i32, i32) {
    %c0_i32 = arith.constant 0 : i32
    %c0_i32_0 = arith.constant 0 : i32
    return %arg0, %c0_i32 : i32, i32
  }
  func.func @transform_1(%arg0: i32) -> (i32, i32) {
    %c0_i32 = arith.constant 0 : i32
    %c0_i32_0 = arith.constant 0 : i32
    %c0_i32_1 = arith.constant 0 : i32
    return %c0_i32, %c0_i32_0 : i32, i32
  }
  func.func @transform_2(%arg0: i32) -> (i32, i32) {
    %c0_i32 = arith.constant 0 : i32
    %c0_i32_0 = arith.constant 0 : i32
    %c0_i32_1 = arith.constant 0 : i32
    return %c0_i32, %c0_i32_0 : i32, i32
  }
  func.func @transform_3(%arg0: i32) -> (i32, i32) {
    %c0_i32 = arith.constant 0 : i32
    %c0_i32_0 = arith.constant 0 : i32
    %c0_i32_1 = arith.constant 0 : i32
    return %c0_i32, %c0_i32_0 : i32, i32
  }
  func.func @transform_4(%arg0: i32) -> (i32, i32) {
    %c0_i32 = arith.constant 0 : i32
    %c0_i32_0 = arith.constant 0 : i32
    %c0_i32_1 = arith.constant 0 : i32
    return %c0_i32, %c0_i32_0 : i32, i32
  }
  func.func @transform_5(%arg0: i32) -> (i32, i32) {
    %c0_i32 = arith.constant 0 : i32
    %c0_i32_0 = arith.constant 0 : i32
    %c0_i32_1 = arith.constant 0 : i32
    return %c0_i32, %c0_i32_0 : i32, i32
  }
  func.func @transform_6(%arg0: i32) -> (i32, i32) {
    %c0_i32 = arith.constant 0 : i32
    %c0_i32_0 = arith.constant 0 : i32
    %c0_i32_1 = arith.constant 0 : i32
    return %c0_i32, %c0_i32_0 : i32, i32
  }
  func.func @transform_7(%arg0: i32) -> (i32, i32) {
    %c0_i32 = arith.constant 0 : i32
    %c0_i32_0 = arith.constant 0 : i32
    return %arg0, %c0_i32 : i32, i32
  }
}

</mosaic_0001>

<bundles_post_ra>
// kernel: faster_rcnn_forward.2
= control target key start
LH: loop header
LB: loop body
LE: loop exit
PB: predicated region body
PF: predicated region fallthrough
CT: control target
= control target key end

     0   :  { %s805_s15 = smov 0   ;;  %s942_s0 = inlined_call_operand.vmem [shape: bf16[2,196,36], index: 0, kind: input, shape index: {}]   ;;  %s943_s1 = inlined_call_operand.vmem [shape: bf16[36,128], index: 1, kind: input, shape index: {}]   ;;  %s944_s2 = inlined_call_operand.vmem [shape: f32[1,128], index: 2, kind: input, shape index: {}]   ;;  %s945_s3 = inlined_call_operand.vmem [shape: f32[56,196], index: 3, kind: input, shape index: {}]   ;;  %s946_s4 = inlined_call_operand.vmem [shape: bf16[2,56,128], index: 4, kind: output, shape index: {}]  }
   0x1 LB: > { %s638_s16 = sadd.s32 4294967295, %s778_s15   ;;  %p642_p0 = scmp.ge.s32.totalorder %s778_s15, 1  ;;  %s778_s15 = sphi %s805_s15, %s14_s15  }
   0x2   : > { %p162_p1 = scmp.lt.s32.totalorder %s778_s15, 3 }
   0x4   : > { %p163_p2 = pnand %p642_p0, %p162_p1 }
   0x5   : > { %p188_p3 = scmp.lt.s32.totalorder (!%p163_p2), %s638_s16, 1 }
   0x6   : > { %166 = sbr.rel (%p163_p2) target bundleno = 448 (0x1c0), region = 36 }
   0xb   : > { %v228_v0 = vld [vmem:[%s943_s1 + $0x10] sm:$0x3]  ;;  %vm351_vm0 = vcmask 1041408   ;;  %s948_s16 = smov (!%p188_p3, %s638_s16), 1  ;;  %v737_v4 = vld [vmem:[%s943_s1 + $0x8] sm:$0xff]  ;;  %v736_v5 = vld [vmem:[%s943_s1] sm:$0xff] }
   0xc   : > { %v305_v1 = vunpack.c.l.b16 %v228_v0  ;;  %s761_s21 = smul.u32 100, %s948_s16  ;;  %vm311_vm1 = vcmask 293888   ;;  %v848_v24 = vld [vmem:[%s944_s2] ss:$0 sm:$0xff]  ;;  %vm489_vm2 = vcmask 1043456   ;;  %vm467_vm3 = vcmask 556032  }
   0xd   : > { %s762_s7 = smul.u32 28, %s948_s16 }
   0xe   : > { %v308_v2 = vpack.c.b16 %v305_v1, %v305_v1  ;;  %s192_s26 = scalar_lea.vmem %s942_s0, %s761_s21 }
   0xf   : > { %v724_v6 = vld [vmem:[%s192_s26] sm:$0xff]  ;;  %v731_v7 = vld [vmem:[%s192_s26 + $0x38] sm:$0xff]  ;;  %v725_v8 = vld [vmem:[%s192_s26 + $0x8] sm:$0xff]  ;;  %s197_s10 = scalar_lea.vmem %s946_s4, %s762_s7 }
  0x10   : > { %v353_v3 = vsel %vm351_vm0, %v308_v2, 0  ;;  %v732_v9 = vld [vmem:[%s192_s26 + $0x40] sm:$0xff]  ;;  %v730_v10 = vld [vmem:[%s192_s26 + $0x30] sm:$0xff]  ;;  %v733_v12 = vld [vmem:[%s192_s26 + $0x48] sm:$0xff] }
  0x11   : > { %360 = vmatpush.bf16.msra.mxu0 %v353_v3  ;;  %756 = vmatpush.bf16.msra.mxu3 %v353_v3  ;;  %v726_v11 = vld [vmem:[%s192_s26 + $0x10] sm:$0xff]  ;;  %v727_v13 = vld [vmem:[%s192_s26 + $0x18] sm:$0xff]  ;;  %v728_v15 = vld [vmem:[%s192_s26 + $0x20] sm:$0xff] }
  0x12   : > { %755 = vmatpush.bf16.msra.mxu2 %v353_v3  ;;  %v734_v14 = vld [vmem:[%s192_s26 + $0x50] sm:$0xff]  ;;  %v735_v16 = vld [vmem:[%s192_s26 + $0x58] sm:$0xff]  ;;  %v223_v17 = vld [vmem:[%s192_s26 + $0x60] sm:$0x3] }
  0x13   : > { %v282_v18 = vunpack.c.l.b16 %v223_v17  ;;  %v729_v19 = vld [vmem:[%s192_s26 + $0x28] sm:$0xff] }
  0x15   : > { %361 = vmatpush.bf16.msra.mxu0 %v737_v4  ;;  %758 = vmatpush.bf16.msra.mxu3 %v737_v4  ;;  %v295_v20 = vpack.c.b16 %v282_v18, %v282_v18 }
  0x16   : > { %757 = vmatpush.bf16.msra.mxu2 %v737_v4 }
  0x19   : > { %362 = vmatpush.bf16.msra.mxu0 %v736_v5  ;;  %760 = vmatpush.bf16.msra.mxu3 %v736_v5 }
  0x1a   : > { %759 = vmatpush.bf16.msra.mxu2 %v736_v5 }
  0x1c   : > { %701 = vmatmul.msk.bf16.vlgmr.msra.gmra.mxu0 %vm311_vm1, %v724_v6  ;;  %708 = vmatmul.msk.bf16.vlgmr.msra.gmra.mxu3 %vm311_vm1, %v731_v7 }
  0x1d   : > { %707 = vmatmul.msk.bf16.vlgmr.msra.gmra.mxu2 %vm311_vm1, %v730_v10 }
  0x2c   : > { %702 = vmatmul.msk.bf16.gmra.mxu0 %vm311_vm1, %v725_v8  ;;  %709 = vmatmul.msk.bf16.gmra.mxu3 %vm311_vm1, %v732_v9 }
  0x3c   : > { %703 = vmatmul.msk.bf16.gmra.mxu0 %vm311_vm1, %v726_v11  ;;  %710 = vmatmul.msk.bf16.gmra.mxu3 %vm311_vm1, %v733_v12 }
  0x4c   : > { %704 = vmatmul.msk.bf16.gmra.mxu0 %vm311_vm1, %v727_v13  ;;  %711 = vmatmul.msk.bf16.gmra.mxu3 %vm311_vm1, %v734_v14 }
  0x5c   : > { %705 = vmatmul.msk.bf16.gmra.mxu0 %vm311_vm1, %v728_v15  ;;  %712 = vmatmul.msk.bf16.gmra.mxu3 %vm311_vm1, %v735_v16 }
  0x6c   : > { %706 = vmatmul.msk.bf16.gmra.mxu0 %vm311_vm1, %v729_v19  ;;  %713 = vmatmul.msk.bf16.gmra.mxu3 %vm311_vm1, %v295_v20 }
  0x99   : > { %v841_v21 = vpop.f32.mrf.mxu0 }
  0x9f   : > { %v399_v22 = vpop.f32.mrf.mxu3 }
  0xa0   : > { %v400_v26 = vadd.f32 %v848_v24, %v399_v22  ;;  %v394_v35 = vpop.f32.mrf.mxu2 }
  0xa1   : > { %v843_v23 = vpop.f32.mrf.mxu0  ;;  %v395_v38 = vadd.f32 %v848_v24, %v394_v35 }
  0xa2   : > { %v442_v30 = vmax.f32 %v400_v26, 0.0 }
  0xa3   : > { %v440_v41 = vmax.f32 %v395_v38, 0.0  ;;  %v453_v38 = vld [vmem:[%s945_s3] sm:$0xff] }
  0xa7   : > { %v401_v25 = vpop.f32.mrf.mxu3 }
  0xa8   : > { %v402_v27 = vadd.f32 %v848_v24, %v401_v25  ;;  %v396_v39 = vpop.f32.mrf.mxu2 }
  0xa9   : > { %v852_v28 = vpop.f32.mrf.mxu0  ;;  %v397_v40 = vadd.f32 %v848_v24, %v396_v39  ;;  %v457_v39 = vld [vmem:[%s945_s3 + $0x20] sm:$0xff] }
  0xaa   : > { %v443_v29 = vmax.f32 %v402_v27, 0.0 }
  0xab   : > { %v441_v42 = vmax.f32 %v397_v40, 0.0  ;;  %v460_v40 = vld [vmem:[%s945_s3 + $0x38] sm:$0xff] }
  0xac   : > { %493 = vmatpush.msra.mxu1 %v443_v29  ;;  %v370_v29 = vadd.f32 %v848_v24, %v852_v28  ;;  %v365_v28 = vadd.f32 %v848_v24, %v841_v21  ;;  %v455_v21 = vld [vmem:[%s945_s3 + $0x10] sm:$0xff] }
  0xae   : > { %494 = vmatpush.msra.mxu1 %v442_v30  ;;  %v430_v35 = vmax.f32 %v370_v29, 0.0 }
  0xaf   : > { %v854_v31 = vpop.f32.mrf.mxu3 }
  0xb0   : > { %495 = vmatpush.msra.mxu1 %v441_v42  ;;  %v405_v18 = vadd.f32 %v848_v24, %v854_v31  ;;  %v454_v31 = vld [vmem:[%s945_s3 + $0x8] sm:$0xff] }
  0xb1   : > { %v856_v32 = vpop.f32.mrf.mxu0  ;;  %v462_v42 = vld [vmem:[%s945_s3 + $0x48] sm:$0xff] }
  0xb2   : > { %496 = vmatpush.msra.mxu1 %v440_v41  ;;  %v372_v25 = vadd.f32 %v848_v24, %v856_v32  ;;  %v444_v30 = vmax.f32 %v405_v18, 0.0  ;;  %v459_v41 = vld [vmem:[%s945_s3 + $0x30] sm:$0xff] }
  0xb4   : > { %v431_v32 = vmax.f32 %v372_v25, 0.0 }
  0xb7   : > { %v406_v33 = vpop.f32.mrf.mxu3 }
  0xb8   : > { %v407_v14 = vadd.f32 %v848_v24, %v406_v33 }
  0xb9   : > { %v374_v34 = vpop.f32.mrf.mxu0 }
  0xba   : > { %v375_v19 = vadd.f32 %v848_v24, %v374_v34  ;;  %v445_v26 = vmax.f32 %v407_v14, 0.0  ;;  %v367_v34 = vadd.f32 %v848_v24, %v843_v23  ;;  %v456_v23 = vld [vmem:[%s945_s3 + $0x18] sm:$0xff] }
  0xbc   : > { %v432_v33 = vmax.f32 %v375_v19, 0.0 }
  0xbf   : > { %v409_v36 = vpop.f32.mrf.mxu3 }
  0xc0   : > { %v410_v10 = vadd.f32 %v848_v24, %v409_v36  ;;  %v429_v36 = vmax.f32 %v367_v34, 0.0 }
  0xc1   : > { %v376_v37 = vpop.f32.mrf.mxu0 }
  0xc2   : > { %v377_v15 = vadd.f32 %v848_v24, %v376_v37  ;;  %v446_v20 = vmax.f32 %v410_v10, 0.0  ;;  %v428_v37 = vmax.f32 %v365_v28, 0.0 }
  0xc4   : > { %v433_v27 = vmax.f32 %v377_v15, 0.0 }
  0xc7   : > { %v411_v43 = vpop.f32.mrf.mxu3 }
  0xc8   : > { %v412_v6 = vadd.f32 %v848_v24, %v411_v43  ;;  %v461_v43 = vld [vmem:[%s945_s3 + $0x40] sm:$0xff] }
  0xc9   : > { %v379_v44 = vpop.f32.mrf.mxu0 }
  0xca   : > { %v380_v11 = vadd.f32 %v848_v24, %v379_v44  ;;  %v447_v16 = vmax.f32 %v412_v6, 0.0  ;;  %v464_v44 = vld [vmem:[%s945_s3 + $0x58] sm:$0xff] }
  0xcc   : > { %v434_v22 = vmax.f32 %v380_v11, 0.0 }
  0xcf   : > { %v414_v45 = vpop.f32.mrf.mxu3 }
  0xd0   : > { %v415_v1 = vadd.f32 %v848_v24, %v414_v45  ;;  %v463_v45 = vld [vmem:[%s945_s3 + $0x50] sm:$0xff] }
  0xd1   : > { %v381_v46 = vpop.f32.mrf.mxu0 }
  0xd2   : > { %v382_v7 = vadd.f32 %v848_v24, %v381_v46  ;;  %v448_v12 = vmax.f32 %v415_v1, 0.0  ;;  %v466_v46 = vld [vmem:[%s945_s3 + $0x68] sm:$0xff] }
  0xd4   : > { %v435_v17 = vmax.f32 %v382_v7, 0.0 }
  0xd7   : > { %v416_v47 = vpop.f32.mrf.mxu3 }
  0xd8   : > { %v417_v61 = vadd.f32 %v848_v24, %v416_v47  ;;  %v465_v47 = vld [vmem:[%s945_s3 + $0x60] sm:$0xff] }
  0xd9   : > { %v384_v48 = vpop.f32.mrf.mxu0 }
  0xda   : > { %v385_v2 = vadd.f32 %v848_v24, %v384_v48  ;;  %v449_v8 = vmax.f32 %v417_v61, 0.0 }
  0xdc   : > { %v436_v13 = vmax.f32 %v385_v2, 0.0 }
  0xdf   : > { %v419_v49 = vpop.f32.mrf.mxu3 }
  0xe0   : > { %v420_v57 = vadd.f32 %v848_v24, %v419_v49 }
  0xe1   : > { %v386_v50 = vpop.f32.mrf.mxu0 }
  0xe2   : > { %v387_v62 = vadd.f32 %v848_v24, %v386_v50  ;;  %v450_v3 = vmax.f32 %v420_v57, 0.0 }
  0xe4   : > { %v437_v9 = vmax.f32 %v387_v62, 0.0 }
  0xe7   : > { %v421_v51 = vpop.f32.mrf.mxu3 }
  0xe8   : > { %v422_v54 = vadd.f32 %v848_v24, %v421_v51 }
  0xe9   : > { %v389_v52 = vpop.f32.mrf.mxu0 }
  0xea   : > { %v390_v58 = vadd.f32 %v848_v24, %v389_v52  ;;  %v451_v63 = vmax.f32 %v422_v54, 0.0 }
  0xec   : > { %v438_v4 = vmax.f32 %v390_v58, 0.0 }
  0xef   : > { %v424_v53 = vpop.f32.mrf.mxu3 }
  0xf0   : > { %v425_v55 = vadd.f32 %v848_v24, %v424_v53 }
  0xf1   : > { %v391_v56 = vpop.f32.mrf.mxu0 }
  0xf2   : > { %v452_v59 = vmax.f32 %v425_v55, 0.0  ;;  %v392_v60 = vadd.f32 %v848_v24, %v391_v56  ;;  %v458_v24 = vld [vmem:[%s945_s3 + $0x28] sm:$0xff] }
  0xf4   : > { %v439_v0 = vmax.f32 %v392_v60, 0.0  ;;  %714 = vmatpush.msk.msrb.mxu2 %vm489_vm2, %v452_v59 }
  0xf6   : > { %497 = vmatpush.msra.mxu1 %v439_v0  ;;  %539 = vmatpush.msrb.mxu2 %v451_v63 }
  0xf7   : > { %v426_v5 = vpop.f32.mrf.mxu3 }
  0xf8   : > { %498 = vmatpush.msra.mxu1 %v438_v4  ;;  %540 = vmatpush.msrb.mxu2 %v450_v3 }
  0xfa   : > { %499 = vmatpush.msra.mxu1 %v437_v9  ;;  %541 = vmatpush.msrb.mxu2 %v449_v8 }
  0xfc   : > { %500 = vmatpush.msra.mxu1 %v436_v13  ;;  %542 = vmatpush.msrb.mxu2 %v448_v12 }
  0xfe   : > { %501 = vmatpush.msra.mxu1 %v435_v17  ;;  %543 = vmatpush.msrb.mxu2 %v447_v16 }
 0x100   : > { %502 = vmatpush.msra.mxu1 %v434_v22  ;;  %544 = vmatpush.msrb.mxu2 %v446_v20 }
 0x102   : > { %503 = vmatpush.msra.mxu1 %v433_v27  ;;  %545 = vmatpush.msrb.mxu2 %v445_v26 }
 0x104   : > { %504 = vmatpush.msra.mxu1 %v432_v33  ;;  %546 = vmatpush.msrb.mxu2 %v444_v30 }
 0x105   : > { %715 = vmatmul.msk.f32.vlgmr.msrb.gmra.mxu2 %vm467_vm3, %v454_v31 }
 0x106   : > { %505 = vmatpush.msra.mxu1 %v431_v32 }
 0x108   : > { %506 = vmatpush.msra.mxu1 %v430_v35 }
 0x10a   : > { %507 = vmatpush.msra.mxu1 %v429_v36 }
 0x10c   : > { %508 = vmatpush.msra.mxu1 %v428_v37 }
 0x10d   : > { %509 = vmatmul.f32.vlgmr.msra.gmra.mxu1 %v453_v38  ;;  %716 = vmatmul.msk.f32.gmra.mxu2 %vm467_vm3, %v456_v23 }
 0x115   : > { %512 = vmatmul.f32.gmra.mxu1 %v455_v21  ;;  %717 = vmatmul.msk.f32.gmra.mxu2 %vm467_vm3, %v458_v24 }
 0x11d   : > { %515 = vmatmul.f32.gmra.mxu1 %v457_v39  ;;  %718 = vmatmul.msk.f32.gmra.mxu2 %vm467_vm3, %v460_v40 }
 0x125   : > { %518 = vmatmul.f32.gmra.mxu1 %v459_v41  ;;  %719 = vmatmul.msk.f32.gmra.mxu2 %vm467_vm3, %v462_v42 }
 0x12d   : > { %521 = vmatmul.f32.gmra.mxu1 %v461_v43  ;;  %720 = vmatmul.msk.f32.gmra.mxu2 %vm467_vm3, %v464_v44 }
 0x135   : > { %524 = vmatmul.f32.gmra.mxu1 %v463_v45  ;;  %721 = vmatmul.msk.f32.gmra.mxu2 %vm467_vm3, %v466_v46 }
 0x13d   : > { %527 = vmatmul.f32.gmra.mxu1 %v465_v47 }
 0x188   : > { %v548_v48 = vpop.f32.mrf.mxu2 }
 0x18a   : > { %v510_v49 = vpop.f32.mrf.mxu1 }
 0x18b   : > { %v549_v52 = vadd.f32 %v548_v48, %v510_v49 }
 0x190   : > { %v551_v50 = vpop.f32.mrf.mxu2 }
 0x192   : > { %v513_v51 = vpop.f32.mrf.mxu1 }
 0x193   : > { %v552_v53 = vadd.f32 %v551_v50, %v513_v51 }
 0x195   : > { %v741_v54 = vpack.c.bf16 %v552_v53, %v549_v52 }
 0x197   : > { %742 = vst [vmem:[%s197_s10] sm:$0xff] %v741_v54  }
 0x198   : > { %v554_v55 = vpop.f32.mrf.mxu2 }
 0x19a   : > { %v516_v56 = vpop.f32.mrf.mxu1 }
 0x19b   : > { %v555_v59 = vadd.f32 %v554_v55, %v516_v56 }
 0x1a0   : > { %v557_v57 = vpop.f32.mrf.mxu2 }
 0x1a2   : > { %v519_v58 = vpop.f32.mrf.mxu1 }
 0x1a3   : > { %v558_v60 = vadd.f32 %v557_v57, %v519_v58 }
 0x1a5   : > { %v746_v61 = vpack.c.bf16 %v558_v60, %v555_v59 }
 0x1a7   : > { %753 = vst [vmem:[%s197_s10 + $0x8] sm:$0xff] %v746_v61  }
 0x1a8   : > { %v560_v62 = vpop.f32.mrf.mxu2 }
 0x1aa   : > { %v522_v63 = vpop.f32.mrf.mxu1 }
 0x1ab   : > { %v561_v2 = vadd.f32 %v560_v62, %v522_v63 }
 0x1b0   : > { %v563_v0 = vpop.f32.mrf.mxu2 }
 0x1b2   : > { %v525_v1 = vpop.f32.mrf.mxu1 }
 0x1b3   : > { %v564_v3 = vadd.f32 %v563_v0, %v525_v1 }
 0x1b5   : > { %v751_v4 = vpack.c.bf16 %v564_v3, %v561_v2 }
 0x1b7   : > { %754 = vst [vmem:[%s197_s10 + $0x10] sm:$0xff] %v751_v4  }
 0x1b8   : > { %v566_v5 = vpop.f32.mrf.mxu2 }
 0x1ba   : > { %v528_v6 = vpop.f32.mrf.mxu1 }
 0x1bb   : > { %v567_v7 = vadd.f32 %v566_v5, %v528_v6 }
 0x1bd   : > { %v575_v8 = vpack.c.bf16 %v567_v7, %v567_v7 }
 0x1bf   : > { %582 = vst [vmem:[%s197_s10 + $0x18] sm:$0xf] %v575_v8 }
 0x1c0 PF: > { %s14_s15 = sadd.s32 1, %s778_s15  }
 0x1c1   : > { %p11_p4 = scmp.ge.s32.totalorder %s14_s15, 4  }
 0x1c3   :  { %13 = sbr.rel (!%p11_p4) target bundleno = 1 (0x1), region = 66 }

// kernel: faster_rcnn_forward.3
= control target key start
LH: loop header
LB: loop body
LE: loop exit
PB: predicated region body
PF: predicated region fallthrough
CT: control target
= control target key end

     0   :  { %s8612_s1 = inlined_call_operand.vmem [shape: bf16[7168,128], index: 1, kind: input, shape index: {}]   ;;  %s8613_s0 = inlined_call_operand.vmem [shape: bf16[8,7168], index: 0, kind: input, shape index: {}]   ;;  %s8614_s2 = inlined_call_operand.vmem [shape: f32[1,128], index: 2, kind: input, shape index: {}]   ;;  %s8615_s4 = inlined_call_operand.vmem [shape: f32[1,128], index: 4, kind: input, shape index: {}]   ;;  %s8616_s3 = inlined_call_operand.vmem [shape: bf16[128,128], index: 3, kind: input, shape index: {}]   ;;  %s8617_s5 = inlined_call_operand.vmem [shape: bf16[128,128], index: 5, kind: input, shape index: {}]   ;;  %s8618_s6 = inlined_call_operand.vmem [shape: f32[1,128], index: 6, kind: input, shape index: {}]   ;;  %s8619_s7 = inlined_call_operand.vmem [shape: f32[8,128], index: 7, kind: output, shape index: {}]  }
   0x1   :  { %v6600_v0 = vld [vmem:[%s8612_s1 + $0x38] sm:$0xff]  ;;  %v6599_v4 = vld [vmem:[%s8612_s1 + $0x30] sm:$0xff]  ;;  %v6598_v8 = vld [vmem:[%s8612_s1 + $0x28] sm:$0xff] }
   0x2   :  { %v6608_v1 = vld [vmem:[%s8612_s1 + $0x78] sm:$0xff]  ;;  %3838 = vmatpush.bf16.msra.mxu0 %v6600_v0  ;;  %v6607_v5 = vld [vmem:[%s8612_s1 + $0x70] sm:$0xff]  ;;  %v6606_v9 = vld [vmem:[%s8612_s1 + $0x68] sm:$0xff] }
   0x3   :  { %v6616_v2 = vld [vmem:[%s8612_s1 + $0xb8] sm:$0xff]  ;;  %3851 = vmatpush.bf16.msra.mxu1 %v6608_v1  ;;  %v6615_v6 = vld [vmem:[%s8612_s1 + $0xb0] sm:$0xff]  ;;  %v6614_v10 = vld [vmem:[%s8612_s1 + $0xa8] sm:$0xff] }
   0x4   :  { %v6624_v3 = vld [vmem:[%s8612_s1 + $0xf8] sm:$0xff]  ;;  %3864 = vmatpush.bf16.msra.mxu2 %v6616_v2  ;;  %v6623_v7 = vld [vmem:[%s8612_s1 + $0xf0] sm:$0xff]  ;;  %v6622_v11 = vld [vmem:[%s8612_s1 + $0xe8] sm:$0xff] }
   0x5   :  { %3877 = vmatpush.bf16.msra.mxu3 %v6624_v3  ;;  %v6597_v12 = vld [vmem:[%s8612_s1 + $0x20] sm:$0xff]  ;;  %v6596_v16 = vld [vmem:[%s8612_s1 + $0x18] sm:$0xff]  ;;  %v6595_v20 = vld [vmem:[%s8612_s1 + $0x10] sm:$0xff] }
   0x6   :  { %3839 = vmatpush.bf16.msra.mxu0 %v6599_v4  ;;  %v6605_v13 = vld [vmem:[%s8612_s1 + $0x60] sm:$0xff]  ;;  %v6604_v17 = vld [vmem:[%s8612_s1 + $0x58] sm:$0xff]  ;;  %v6603_v21 = vld [vmem:[%s8612_s1 + $0x50] sm:$0xff] }
   0x7   :  { %3852 = vmatpush.bf16.msra.mxu1 %v6607_v5  ;;  %v6613_v14 = vld [vmem:[%s8612_s1 + $0xa0] sm:$0xff]  ;;  %v6612_v18 = vld [vmem:[%s8612_s1 + $0x98] sm:$0xff]  ;;  %v6611_v22 = vld [vmem:[%s8612_s1 + $0x90] sm:$0xff] }
   0x8   :  { %3865 = vmatpush.bf16.msra.mxu2 %v6615_v6  ;;  %v6621_v15 = vld [vmem:[%s8612_s1 + $0xe0] sm:$0xff]  ;;  %v6620_v19 = vld [vmem:[%s8612_s1 + $0xd8] sm:$0xff]  ;;  %v6619_v23 = vld [vmem:[%s8612_s1 + $0xd0] sm:$0xff] }
   0x9   :  { %3878 = vmatpush.bf16.msra.mxu3 %v6623_v7  ;;  %v6594_v24 = vld [vmem:[%s8612_s1 + $0x8] sm:$0xff]  ;;  %v26_v29 = vld [vmem:[%s8613_s0] sm:$0xff]  ;;  %v6632_v38 = vld [vmem:[%s8612_s1 + $0x138] sm:$0xff] }
   0xa   :  { %3840 = vmatpush.bf16.msra.mxu0 %v6598_v8  ;;  %v6602_v25 = vld [vmem:[%s8612_s1 + $0x48] sm:$0xff]  ;;  %v6593_v30 = vld [vmem:[%s8612_s1] sm:$0xff]  ;;  %v982_v33 = vunpack.c.l.b16 %v26_v29  ;;  %v983_v37 = vunpack.c.h.b16 %v26_v29  ;;  %v6640_v39 = vld [vmem:[%s8612_s1 + $0x178] sm:$0xff] }
   0xb   :  { %3853 = vmatpush.bf16.msra.mxu1 %v6606_v9  ;;  %v6610_v26 = vld [vmem:[%s8612_s1 + $0x88] sm:$0xff]  ;;  %v6601_v31 = vld [vmem:[%s8612_s1 + $0x40] sm:$0xff]  ;;  %v6648_v40 = vld [vmem:[%s8612_s1 + $0x1b8] sm:$0xff] }
   0xc   :  { %3866 = vmatpush.bf16.msra.mxu2 %v6614_v10  ;;  %v6618_v27 = vld [vmem:[%s8612_s1 + $0xc8] sm:$0xff]  ;;  %v6609_v34 = vld [vmem:[%s8612_s1 + $0x80] sm:$0xff]  ;;  %v6656_v41 = vld [vmem:[%s8612_s1 + $0x1f8] sm:$0xff]  ;;  %v1038_v43 = vpack.c.b16 %v982_v33, %v982_v33  ;;  %v1039_v45 = vpack.c.b16 %v983_v37, %v983_v37 }
   0xd   :  { %3879 = vmatpush.bf16.msra.mxu3 %v6622_v11  ;;  %v27_v28 = vld [vmem:[%s8613_s0 + $0x8] sm:$0xff]  ;;  %v6617_v35 = vld [vmem:[%s8612_s1 + $0xc0] sm:$0xff]  ;;  %v6631_v46 = vld [vmem:[%s8612_s1 + $0x130] sm:$0xff] }
   0xe   :  { %3841 = vmatpush.bf16.msra.mxu0 %v6597_v12  ;;  %v984_v32 = vunpack.c.l.b16 %v27_v28  ;;  %v985_v36 = vunpack.c.h.b16 %v27_v28  ;;  %v6639_v47 = vld [vmem:[%s8612_s1 + $0x170] sm:$0xff]  ;;  %v6630_v50 = vld [vmem:[%s8612_s1 + $0x128] sm:$0xff]  ;;  %v6629_v54 = vld [vmem:[%s8612_s1 + $0x120] sm:$0xff] }
   0xf   :  { %3854 = vmatpush.bf16.msra.mxu1 %v6605_v13  ;;  %v6647_v48 = vld [vmem:[%s8612_s1 + $0x1b0] sm:$0xff]  ;;  %v6638_v51 = vld [vmem:[%s8612_s1 + $0x168] sm:$0xff]  ;;  %v6637_v55 = vld [vmem:[%s8612_s1 + $0x160] sm:$0xff] }
  0x10   :  { %3867 = vmatpush.bf16.msra.mxu2 %v6613_v14  ;;  %v1040_v42 = vpack.c.b16 %v984_v32, %v984_v32  ;;  %v1041_v44 = vpack.c.b16 %v985_v36, %v985_v36  ;;  %v6655_v49 = vld [vmem:[%s8612_s1 + $0x1f0] sm:$0xff]  ;;  %v6646_v52 = vld [vmem:[%s8612_s1 + $0x1a8] sm:$0xff]  ;;  %v6645_v56 = vld [vmem:[%s8612_s1 + $0x1a0] sm:$0xff] }
  0x11   :  { %3880 = vmatpush.bf16.msra.mxu3 %v6621_v15  ;;  %v6654_v53 = vld [vmem:[%s8612_s1 + $0x1e8] sm:$0xff]  ;;  %v6653_v57 = vld [vmem:[%s8612_s1 + $0x1e0] sm:$0xff]  ;;  %v6628_v58 = vld [vmem:[%s8612_s1 + $0x118] sm:$0xff] }
  0x12   :  { %3842 = vmatpush.bf16.msra.mxu0 %v6596_v16  ;;  %v6636_v59 = vld [vmem:[%s8612_s1 + $0x158] sm:$0xff]  ;;  %v6627_v62 = vld [vmem:[%s8612_s1 + $0x110] sm:$0xff]  ;;  %v6626_v2 = vld [vmem:[%s8612_s1 + $0x108] sm:$0xff] }
  0x13   :  { %3855 = vmatpush.bf16.msra.mxu1 %v6604_v17  ;;  %v6644_v60 = vld [vmem:[%s8612_s1 + $0x198] sm:$0xff]  ;;  %v6635_v63 = vld [vmem:[%s8612_s1 + $0x150] sm:$0xff]  ;;  %v6634_v3 = vld [vmem:[%s8612_s1 + $0x148] sm:$0xff] }
  0x14   :  { %3868 = vmatpush.bf16.msra.mxu2 %v6612_v18  ;;  %v6652_v61 = vld [vmem:[%s8612_s1 + $0x1d8] sm:$0xff]  ;;  %v6643_v0 = vld [vmem:[%s8612_s1 + $0x190] sm:$0xff]  ;;  %v6642_v4 = vld [vmem:[%s8612_s1 + $0x188] sm:$0xff] }
  0x15   :  { %3881 = vmatpush.bf16.msra.mxu3 %v6620_v19  ;;  %v6651_v1 = vld [vmem:[%s8612_s1 + $0x1d0] sm:$0xff]  ;;  %v6650_v5 = vld [vmem:[%s8612_s1 + $0x1c8] sm:$0xff]  ;;  %v29_v6 = vld [vmem:[%s8613_s0 + $0x18] sm:$0xff] }
  0x16   :  { %3843 = vmatpush.bf16.msra.mxu0 %v6595_v20  ;;  %v28_v7 = vld [vmem:[%s8613_s0 + $0x10] sm:$0xff]  ;;  %v6625_v8 = vld [vmem:[%s8612_s1 + $0x100] sm:$0xff]  ;;  %v988_v10 = vunpack.c.l.b16 %v29_v6  ;;  %v989_v14 = vunpack.c.h.b16 %v29_v6  ;;  %v6664_v16 = vld [vmem:[%s8612_s1 + $0x238] sm:$0xff] }
  0x17   :  { %3856 = vmatpush.bf16.msra.mxu1 %v6603_v21  ;;  %v6633_v9 = vld [vmem:[%s8612_s1 + $0x140] sm:$0xff]  ;;  %v986_v11 = vunpack.c.l.b16 %v28_v7  ;;  %v987_v15 = vunpack.c.h.b16 %v28_v7  ;;  %v6672_v17 = vld [vmem:[%s8612_s1 + $0x278] sm:$0xff]  ;;  %v6662_v28 = vld [vmem:[%s8612_s1 + $0x228] sm:$0xff] }
  0x18   :  { %3869 = vmatpush.bf16.msra.mxu2 %v6611_v22  ;;  %v6641_v12 = vld [vmem:[%s8612_s1 + $0x180] sm:$0xff]  ;;  %v6680_v18 = vld [vmem:[%s8612_s1 + $0x2b8] sm:$0xff]  ;;  %v1044_v20 = vpack.c.b16 %v988_v10, %v988_v10  ;;  %v1045_v22 = vpack.c.b16 %v989_v14, %v989_v14  ;;  %v6670_v29 = vld [vmem:[%s8612_s1 + $0x268] sm:$0xff] }
  0x19   :  { %3882 = vmatpush.bf16.msra.mxu3 %v6619_v23  ;;  %v6649_v13 = vld [vmem:[%s8612_s1 + $0x1c0] sm:$0xff]  ;;  %v6688_v19 = vld [vmem:[%s8612_s1 + $0x2f8] sm:$0xff]  ;;  %v1042_v21 = vpack.c.b16 %v986_v11, %v986_v11  ;;  %v1043_v23 = vpack.c.b16 %v987_v15, %v987_v15  ;;  %v6694_v6 = vld [vmem:[%s8612_s1 + $0x328] sm:$0xff] }
  0x1a   :  { %3844 = vmatpush.bf16.msra.mxu0 %v6594_v24  ;;  %v6663_v24 = vld [vmem:[%s8612_s1 + $0x230] sm:$0xff]  ;;  %v6661_v32 = vld [vmem:[%s8612_s1 + $0x220] sm:$0xff]  ;;  %v6660_v36 = vld [vmem:[%s8612_s1 + $0x218] sm:$0xff] }
  0x1b   :  { %3857 = vmatpush.bf16.msra.mxu1 %v6602_v25  ;;  %v6671_v25 = vld [vmem:[%s8612_s1 + $0x270] sm:$0xff]  ;;  %v6669_v33 = vld [vmem:[%s8612_s1 + $0x260] sm:$0xff]  ;;  %v6668_v37 = vld [vmem:[%s8612_s1 + $0x258] sm:$0xff] }
  0x1c   :  { %3870 = vmatpush.bf16.msra.mxu2 %v6610_v26  ;;  %v6679_v26 = vld [vmem:[%s8612_s1 + $0x2b0] sm:$0xff]  ;;  %v6702_v7 = vld [vmem:[%s8612_s1 + $0x368] sm:$0xff]  ;;  %v6693_v10 = vld [vmem:[%s8612_s1 + $0x320] sm:$0xff] }
  0x1d   :  { %3883 = vmatpush.bf16.msra.mxu3 %v6618_v27  ;;  %v6687_v27 = vld [vmem:[%s8612_s1 + $0x2f0] sm:$0xff]  ;;  %v6701_v11 = vld [vmem:[%s8612_s1 + $0x360] sm:$0xff]  ;;  %v6692_v14 = vld [vmem:[%s8612_s1 + $0x318] sm:$0xff] }
  0x1e   :  { %3845 = vmatpush.bf16.msra.mxu0 %v6593_v30  ;;  %v6678_v30 = vld [vmem:[%s8612_s1 + $0x2a8] sm:$0xff]  ;;  %v6700_v15 = vld [vmem:[%s8612_s1 + $0x358] sm:$0xff] }
  0x1f   :  { %3858 = vmatpush.bf16.msra.mxu1 %v6601_v31  ;;  %v6686_v31 = vld [vmem:[%s8612_s1 + $0x2e8] sm:$0xff] }
  0x20   :  { %3871 = vmatpush.bf16.msra.mxu2 %v6609_v34  ;;  %v6677_v34 = vld [vmem:[%s8612_s1 + $0x2a0] sm:$0xff] }
  0x21   :  { %3884 = vmatpush.bf16.msra.mxu3 %v6617_v35  ;;  %3846 = vmatmul.bf16.vlgmr.msra.gmra.mxu0 %v1038_v43  ;;  %v6685_v35 = vld [vmem:[%s8612_s1 + $0x2e0] sm:$0xff]  ;;  %v6683_v43 = vld [vmem:[%s8612_s1 + $0x2d0] sm:$0xff] }
  0x22   :  { %3890 = vmatpush.bf16.msrb.mxu0 %v6632_v38  ;;  %3859 = vmatmul.bf16.vlgmr.msra.gmra.mxu1 %v1039_v45  ;;  %v6676_v38 = vld [vmem:[%s8612_s1 + $0x298] sm:$0xff]  ;;  %v6666_v45 = vld [vmem:[%s8612_s1 + $0x248] sm:$0xff] }
  0x23   :  { %3903 = vmatpush.bf16.msrb.mxu1 %v6640_v39  ;;  %3872 = vmatmul.bf16.vlgmr.msra.gmra.mxu2 %v1040_v42  ;;  %v6684_v39 = vld [vmem:[%s8612_s1 + $0x2d8] sm:$0xff]  ;;  %v6675_v42 = vld [vmem:[%s8612_s1 + $0x290] sm:$0xff] }
  0x24   :  { %3916 = vmatpush.bf16.msrb.mxu2 %v6648_v40  ;;  %3885 = vmatmul.bf16.vlgmr.msra.gmra.mxu3 %v1041_v44  ;;  %v6659_v40 = vld [vmem:[%s8612_s1 + $0x210] sm:$0xff]  ;;  %v6658_v44 = vld [vmem:[%s8612_s1 + $0x208] sm:$0xff] }
  0x25   :  { %3929 = vmatpush.bf16.msrb.mxu3 %v6656_v41  ;;  %v6667_v41 = vld [vmem:[%s8612_s1 + $0x250] sm:$0xff] }
  0x26   :  { %3891 = vmatpush.bf16.msrb.mxu0 %v6631_v46  ;;  %v6674_v46 = vld [vmem:[%s8612_s1 + $0x288] sm:$0xff] }
  0x27   :  { %3904 = vmatpush.bf16.msrb.mxu1 %v6639_v47  ;;  %v6682_v47 = vld [vmem:[%s8612_s1 + $0x2c8] sm:$0xff] }
  0x28   :  { %3917 = vmatpush.bf16.msrb.mxu2 %v6647_v48  ;;  %v30_v48 = vld [vmem:[%s8613_s0 + $0x20] sm:$0xff] }
  0x29   :  { %3930 = vmatpush.bf16.msrb.mxu3 %v6655_v49  ;;  %v31_v49 = vld [vmem:[%s8613_s0 + $0x28] sm:$0xff] }
  0x2a   :  { %3892 = vmatpush.bf16.msrb.mxu0 %v6630_v50  ;;  %v6657_v50 = vld [vmem:[%s8612_s1 + $0x200] sm:$0xff] }
  0x2b   :  { %3905 = vmatpush.bf16.msrb.mxu1 %v6638_v51  ;;  %v6665_v51 = vld [vmem:[%s8612_s1 + $0x240] sm:$0xff] }
  0x2c   :  { %3918 = vmatpush.bf16.msrb.mxu2 %v6646_v52  ;;  %v990_v52 = vunpack.c.l.b16 %v30_v48 }
  0x2d   :  { %3931 = vmatpush.bf16.msrb.mxu3 %v6654_v53  ;;  %v992_v53 = vunpack.c.l.b16 %v31_v49 }
  0x2e   :  { %3893 = vmatpush.bf16.msrb.mxu0 %v6629_v54  ;;  %v6673_v54 = vld [vmem:[%s8612_s1 + $0x280] sm:$0xff] }
  0x2f   :  { %3906 = vmatpush.bf16.msrb.mxu1 %v6637_v55  ;;  %v6681_v55 = vld [vmem:[%s8612_s1 + $0x2c0] sm:$0xff] }
  0x30   :  { %3919 = vmatpush.bf16.msrb.mxu2 %v6645_v56  ;;  %v991_v56 = vunpack.c.h.b16 %v30_v48  ;;  %v6726_v48 = vld [vmem:[%s8612_s1 + $0x428] sm:$0xff] }
  0x31   :  { %3932 = vmatpush.bf16.msrb.mxu3 %v6653_v57  ;;  %v993_v57 = vunpack.c.h.b16 %v31_v49  ;;  %v6734_v49 = vld [vmem:[%s8612_s1 + $0x468] sm:$0xff] }
  0x32   :  { %3894 = vmatpush.bf16.msrb.mxu0 %v6628_v58  ;;  %v6696_v58 = vld [vmem:[%s8612_s1 + $0x338] sm:$0xff] }
  0x33   :  { %3907 = vmatpush.bf16.msrb.mxu1 %v6636_v59  ;;  %v6704_v59 = vld [vmem:[%s8612_s1 + $0x378] sm:$0xff] }
  0x34   :  { %3920 = vmatpush.bf16.msrb.mxu2 %v6644_v60  ;;  %v6712_v60 = vld [vmem:[%s8612_s1 + $0x3b8] sm:$0xff] }
  0x35   :  { %3933 = vmatpush.bf16.msrb.mxu3 %v6652_v61  ;;  %v6720_v61 = vld [vmem:[%s8612_s1 + $0x3f8] sm:$0xff] }
  0x36   :  { %3895 = vmatpush.bf16.msrb.mxu0 %v6627_v62  ;;  %v1046_v62 = vpack.c.b16 %v990_v52, %v990_v52  ;;  %v6725_v52 = vld [vmem:[%s8612_s1 + $0x420] sm:$0xff] }
  0x37   :  { %3908 = vmatpush.bf16.msrb.mxu1 %v6635_v63  ;;  %v1048_v63 = vpack.c.b16 %v992_v53, %v992_v53  ;;  %v6733_v53 = vld [vmem:[%s8612_s1 + $0x460] sm:$0xff] }
  0x38   :  { %3921 = vmatpush.bf16.msrb.mxu2 %v6643_v0  ;;  %v1047_v0 = vpack.c.b16 %v991_v56, %v991_v56  ;;  %v6724_v56 = vld [vmem:[%s8612_s1 + $0x418] sm:$0xff] }
  0x39   :  { %3934 = vmatpush.bf16.msrb.mxu3 %v6651_v1  ;;  %v1049_v1 = vpack.c.b16 %v993_v57, %v993_v57  ;;  %v6732_v57 = vld [vmem:[%s8612_s1 + $0x458] sm:$0xff] }
  0x3a   :  { %3896 = vmatpush.bf16.msrb.mxu0 %v6626_v2  ;;  %v6695_v2 = vld [vmem:[%s8612_s1 + $0x330] sm:$0xff] }
  0x3b   :  { %3909 = vmatpush.bf16.msrb.mxu1 %v6634_v3  ;;  %v6703_v3 = vld [vmem:[%s8612_s1 + $0x370] sm:$0xff] }
  0x3c   :  { %3922 = vmatpush.bf16.msrb.mxu2 %v6642_v4  ;;  %v6711_v4 = vld [vmem:[%s8612_s1 + $0x3b0] sm:$0xff] }
  0x3d   :  { %3935 = vmatpush.bf16.msrb.mxu3 %v6650_v5  ;;  %v6719_v5 = vld [vmem:[%s8612_s1 + $0x3f0] sm:$0xff] }
  0x3e   :  { %3897 = vmatpush.bf16.msrb.mxu0 %v6625_v8  ;;  %v6710_v8 = vld [vmem:[%s8612_s1 + $0x3a8] sm:$0xff] }
  0x3f   :  { %3910 = vmatpush.bf16.msrb.mxu1 %v6633_v9  ;;  %v6718_v9 = vld [vmem:[%s8612_s1 + $0x3e8] sm:$0xff] }
  0x40   :  { %3923 = vmatpush.bf16.msrb.mxu2 %v6641_v12  ;;  %v6709_v12 = vld [vmem:[%s8612_s1 + $0x3a0] sm:$0xff] }
  0x41   :  { %3936 = vmatpush.bf16.msrb.mxu3 %v6649_v13  ;;  %3898 = vmatmul.bf16.vlgmr.msrb.gmra.mxu0 %v1042_v21  ;;  %v6717_v13 = vld [vmem:[%s8612_s1 + $0x3e0] sm:$0xff]  ;;  %v6715_v21 = vld [vmem:[%s8612_s1 + $0x3d0] sm:$0xff] }
  0x42   :  { %3942 = vmatpush.bf16.msra.mxu0 %v6664_v16  ;;  %3911 = vmatmul.bf16.vlgmr.msrb.gmra.mxu1 %v1043_v23  ;;  %v6708_v16 = vld [vmem:[%s8612_s1 + $0x398] sm:$0xff]  ;;  %v6698_v23 = vld [vmem:[%s8612_s1 + $0x348] sm:$0xff] }
  0x43   :  { %3955 = vmatpush.bf16.msra.mxu1 %v6672_v17  ;;  %3924 = vmatmul.bf16.vlgmr.msrb.gmra.mxu2 %v1044_v20  ;;  %v6716_v17 = vld [vmem:[%s8612_s1 + $0x3d8] sm:$0xff]  ;;  %v6707_v20 = vld [vmem:[%s8612_s1 + $0x390] sm:$0xff] }
  0x44   :  { %3968 = vmatpush.bf16.msra.mxu2 %v6680_v18  ;;  %3937 = vmatmul.bf16.vlgmr.msrb.gmra.mxu3 %v1045_v22  ;;  %v6691_v18 = vld [vmem:[%s8612_s1 + $0x310] sm:$0xff]  ;;  %v6690_v22 = vld [vmem:[%s8612_s1 + $0x308] sm:$0xff] }
  0x45   :  { %3981 = vmatpush.bf16.msra.mxu3 %v6688_v19  ;;  %v6699_v19 = vld [vmem:[%s8612_s1 + $0x350] sm:$0xff] }
  0x46   :  { %3943 = vmatpush.bf16.msra.mxu0 %v6663_v24  ;;  %v6706_v24 = vld [vmem:[%s8612_s1 + $0x388] sm:$0xff] }
  0x47   :  { %3956 = vmatpush.bf16.msra.mxu1 %v6671_v25  ;;  %v6714_v25 = vld [vmem:[%s8612_s1 + $0x3c8] sm:$0xff] }
  0x48   :  { %3969 = vmatpush.bf16.msra.mxu2 %v6679_v26  ;;  %v32_v26 = vld [vmem:[%s8613_s0 + $0x30] sm:$0xff] }
  0x49   :  { %3982 = vmatpush.bf16.msra.mxu3 %v6687_v27  ;;  %v33_v27 = vld [vmem:[%s8613_s0 + $0x38] sm:$0xff] }
  0x4a   :  { %3944 = vmatpush.bf16.msra.mxu0 %v6662_v28  ;;  %v6689_v28 = vld [vmem:[%s8612_s1 + $0x300] sm:$0xff] }
  0x4b   :  { %3957 = vmatpush.bf16.msra.mxu1 %v6670_v29  ;;  %v6697_v29 = vld [vmem:[%s8612_s1 + $0x340] sm:$0xff] }
  0x4c   :  { %3970 = vmatpush.bf16.msra.mxu2 %v6678_v30  ;;  %v994_v30 = vunpack.c.l.b16 %v32_v26 }
  0x4d   :  { %3983 = vmatpush.bf16.msra.mxu3 %v6686_v31  ;;  %v996_v31 = vunpack.c.l.b16 %v33_v27 }
  0x4e   :  { %3945 = vmatpush.bf16.msra.mxu0 %v6661_v32  ;;  %v6705_v32 = vld [vmem:[%s8612_s1 + $0x380] sm:$0xff] }
  0x4f   :  { %3958 = vmatpush.bf16.msra.mxu1 %v6669_v33  ;;  %v6713_v33 = vld [vmem:[%s8612_s1 + $0x3c0] sm:$0xff] }
  0x50   :  { %3971 = vmatpush.bf16.msra.mxu2 %v6677_v34  ;;  %v995_v34 = vunpack.c.h.b16 %v32_v26  ;;  %v6758_v26 = vld [vmem:[%s8612_s1 + $0x528] sm:$0xff] }
  0x51   :  { %3984 = vmatpush.bf16.msra.mxu3 %v6685_v35  ;;  %v997_v35 = vunpack.c.h.b16 %v33_v27  ;;  %v6766_v27 = vld [vmem:[%s8612_s1 + $0x568] sm:$0xff] }
  0x52   :  { %3946 = vmatpush.bf16.msra.mxu0 %v6660_v36  ;;  %v6728_v36 = vld [vmem:[%s8612_s1 + $0x438] sm:$0xff] }
  0x53   :  { %3959 = vmatpush.bf16.msra.mxu1 %v6668_v37  ;;  %v6736_v37 = vld [vmem:[%s8612_s1 + $0x478] sm:$0xff] }
  0x54   :  { %3972 = vmatpush.bf16.msra.mxu2 %v6676_v38  ;;  %v6744_v38 = vld [vmem:[%s8612_s1 + $0x4b8] sm:$0xff] }
  0x55   :  { %3985 = vmatpush.bf16.msra.mxu3 %v6684_v39  ;;  %v6752_v39 = vld [vmem:[%s8612_s1 + $0x4f8] sm:$0xff] }
  0x56   :  { %3947 = vmatpush.bf16.msra.mxu0 %v6659_v40  ;;  %v1050_v40 = vpack.c.b16 %v994_v30, %v994_v30  ;;  %v6782_v30 = vld [vmem:[%s8612_s1 + $0x5e8] sm:$0xff] }
  0x57   :  { %3960 = vmatpush.bf16.msra.mxu1 %v6667_v41  ;;  %v1052_v41 = vpack.c.b16 %v996_v31, %v996_v31 }
  0x58   :  { %3973 = vmatpush.bf16.msra.mxu2 %v6675_v42  ;;  %v1051_v42 = vpack.c.b16 %v995_v34, %v995_v34 }
  0x59   :  { %3986 = vmatpush.bf16.msra.mxu3 %v6683_v43  ;;  %v1053_v43 = vpack.c.b16 %v997_v35, %v997_v35 }
  0x5a   :  { %3948 = vmatpush.bf16.msra.mxu0 %v6658_v44  ;;  %v6727_v44 = vld [vmem:[%s8612_s1 + $0x430] sm:$0xff] }
  0x5b   :  { %3961 = vmatpush.bf16.msra.mxu1 %v6666_v45  ;;  %v6735_v45 = vld [vmem:[%s8612_s1 + $0x470] sm:$0xff] }
  0x5c   :  { %3974 = vmatpush.bf16.msra.mxu2 %v6674_v46  ;;  %v6743_v46 = vld [vmem:[%s8612_s1 + $0x4b0] sm:$0xff] }
  0x5d   :  { %3987 = vmatpush.bf16.msra.mxu3 %v6682_v47  ;;  %v6751_v47 = vld [vmem:[%s8612_s1 + $0x4f0] sm:$0xff] }
  0x5e   :  { %3949 = vmatpush.bf16.msra.mxu0 %v6657_v50  ;;  %v6742_v50 = vld [vmem:[%s8612_s1 + $0x4a8] sm:$0xff] }
  0x5f   :  { %3962 = vmatpush.bf16.msra.mxu1 %v6665_v51  ;;  %v6750_v51 = vld [vmem:[%s8612_s1 + $0x4e8] sm:$0xff] }
  0x60   :  { %3975 = vmatpush.bf16.msra.mxu2 %v6673_v54  ;;  %v6741_v54 = vld [vmem:[%s8612_s1 + $0x4a0] sm:$0xff] }
  0x61   :  { %3988 = vmatpush.bf16.msra.mxu3 %v6681_v55  ;;  %3950 = vmatmul.bf16.vlgmr.msra.gmra.mxu0 %v1046_v62  ;;  %v6749_v55 = vld [vmem:[%s8612_s1 + $0x4e0] sm:$0xff]  ;;  %v6739_v62 = vld [vmem:[%s8612_s1 + $0x490] sm:$0xff] }
  0x62   :  { %3994 = vmatpush.bf16.msrb.mxu0 %v6696_v58  ;;  %3963 = vmatmul.bf16.vlgmr.msra.gmra.mxu1 %v1047_v0  ;;  %v6740_v58 = vld [vmem:[%s8612_s1 + $0x498] sm:$0xff]  ;;  %v6722_v0 = vld [vmem:[%s8612_s1 + $0x408] sm:$0xff] }
  0x63   :  { %4007 = vmatpush.bf16.msrb.mxu1 %v6704_v59  ;;  %3976 = vmatmul.bf16.vlgmr.msra.gmra.mxu2 %v1048_v63  ;;  %v6748_v59 = vld [vmem:[%s8612_s1 + $0x4d8] sm:$0xff]  ;;  %v6747_v63 = vld [vmem:[%s8612_s1 + $0x4d0] sm:$0xff] }
  0x64   :  { %4020 = vmatpush.bf16.msrb.mxu2 %v6712_v60  ;;  %3989 = vmatmul.bf16.vlgmr.msra.gmra.mxu3 %v1049_v1  ;;  %v6723_v60 = vld [vmem:[%s8612_s1 + $0x410] sm:$0xff]  ;;  %v6730_v1 = vld [vmem:[%s8612_s1 + $0x448] sm:$0xff] }
  0x65   :  { %4033 = vmatpush.bf16.msrb.mxu3 %v6720_v61  ;;  %v6731_v61 = vld [vmem:[%s8612_s1 + $0x450] sm:$0xff] }
  0x66   :  { %3995 = vmatpush.bf16.msrb.mxu0 %v6695_v2  ;;  %v6738_v2 = vld [vmem:[%s8612_s1 + $0x488] sm:$0xff] }
  0x67   :  { %4008 = vmatpush.bf16.msrb.mxu1 %v6703_v3  ;;  %v6746_v3 = vld [vmem:[%s8612_s1 + $0x4c8] sm:$0xff] }
  0x68   :  { %4021 = vmatpush.bf16.msrb.mxu2 %v6711_v4  ;;  %v34_v4 = vld [vmem:[%s8613_s0 + $0x40] sm:$0xff] }
  0x69   :  { %4034 = vmatpush.bf16.msrb.mxu3 %v6719_v5  ;;  %v35_v5 = vld [vmem:[%s8613_s0 + $0x48] sm:$0xff] }
  0x6a   :  { %3996 = vmatpush.bf16.msrb.mxu0 %v6694_v6  ;;  %v6721_v6 = vld [vmem:[%s8612_s1 + $0x400] sm:$0xff] }
  0x6b   :  { %4009 = vmatpush.bf16.msrb.mxu1 %v6702_v7  ;;  %v6729_v7 = vld [vmem:[%s8612_s1 + $0x440] sm:$0xff] }
  0x6c   :  { %4022 = vmatpush.bf16.msrb.mxu2 %v6710_v8  ;;  %v998_v8 = vunpack.c.l.b16 %v34_v4 }
  0x6d   :  { %4035 = vmatpush.bf16.msrb.mxu3 %v6718_v9  ;;  %v1000_v9 = vunpack.c.l.b16 %v35_v5 }
  0x6e   :  { %3997 = vmatpush.bf16.msrb.mxu0 %v6693_v10  ;;  %v6737_v10 = vld [vmem:[%s8612_s1 + $0x480] sm:$0xff] }
  0x6f   :  { %4010 = vmatpush.bf16.msrb.mxu1 %v6701_v11  ;;  %v6745_v11 = vld [vmem:[%s8612_s1 + $0x4c0] sm:$0xff] }
  0x70   :  { %4023 = vmatpush.bf16.msrb.mxu2 %v6709_v12  ;;  %v999_v12 = vunpack.c.h.b16 %v34_v4 }
  0x71   :  { %4036 = vmatpush.bf16.msrb.mxu3 %v6717_v13  ;;  %v1001_v13 = vunpack.c.h.b16 %v35_v5  ;;  %v6792_v5 = vld [vmem:[%s8612_s1 + $0x638] sm:$0xff] }
  0x72   :  { %3998 = vmatpush.bf16.msrb.mxu0 %v6692_v14  ;;  %v6760_v14 = vld [vmem:[%s8612_s1 + $0x538] sm:$0xff] }
  0x73   :  { %4011 = vmatpush.bf16.msrb.mxu1 %v6700_v15  ;;  %v6768_v15 = vld [vmem:[%s8612_s1 + $0x578] sm:$0xff] }
  0x74   :  { %4024 = vmatpush.bf16.msrb.mxu2 %v6708_v16  ;;  %v6776_v16 = vld [vmem:[%s8612_s1 + $0x5b8] sm:$0xff] }
  0x75   :  { %4037 = vmatpush.bf16.msrb.mxu3 %v6716_v17  ;;  %v6784_v17 = vld [vmem:[%s8612_s1 + $0x5f8] sm:$0xff] }
  0x76   :  { %3999 = vmatpush.bf16.msrb.mxu0 %v6691_v18  ;;  %v1054_v18 = vpack.c.b16 %v998_v8, %v998_v8  ;;  %v6816_v8 = vld [vmem:[%s8612_s1 + $0x6f8] sm:$0xff] }
  0x77   :  { %4012 = vmatpush.bf16.msrb.mxu1 %v6699_v19  ;;  %v1056_v19 = vpack.c.b16 %v1000_v9, %v1000_v9 }
  0x78   :  { %4025 = vmatpush.bf16.msrb.mxu2 %v6707_v20  ;;  %v1055_v20 = vpack.c.b16 %v999_v12, %v999_v12 }
  0x79   :  { %4038 = vmatpush.bf16.msrb.mxu3 %v6715_v21  ;;  %v1057_v21 = vpack.c.b16 %v1001_v13, %v1001_v13  ;;  %v6791_v13 = vld [vmem:[%s8612_s1 + $0x630] sm:$0xff] }
  0x7a   :  { %4000 = vmatpush.bf16.msrb.mxu0 %v6690_v22  ;;  %v6759_v22 = vld [vmem:[%s8612_s1 + $0x530] sm:$0xff] }
  0x7b   :  { %4013 = vmatpush.bf16.msrb.mxu1 %v6698_v23  ;;  %v6767_v23 = vld [vmem:[%s8612_s1 + $0x570] sm:$0xff] }
  0x7c   :  { %4026 = vmatpush.bf16.msrb.mxu2 %v6706_v24  ;;  %v6775_v24 = vld [vmem:[%s8612_s1 + $0x5b0] sm:$0xff] }
  0x7d   :  { %4039 = vmatpush.bf16.msrb.mxu3 %v6714_v25  ;;  %v6783_v25 = vld [vmem:[%s8612_s1 + $0x5f0] sm:$0xff] }
  0x7e   :  { %4001 = vmatpush.bf16.msrb.mxu0 %v6689_v28  ;;  %v7057_v28 = vld [vmem:[%s8614_s2] ss:$0 sm:$0xff] }
  0x7f   :  { %4014 = vmatpush.bf16.msrb.mxu1 %v6697_v29  ;;  %v6774_v29 = vld [vmem:[%s8612_s1 + $0x5a8] sm:$0xff] }
  0x80   :  { %4027 = vmatpush.bf16.msrb.mxu2 %v6705_v32  ;;  %v6757_v32 = vld [vmem:[%s8612_s1 + $0x520] sm:$0xff] }
  0x81   :  { %4040 = vmatpush.bf16.msrb.mxu3 %v6713_v33  ;;  %4002 = vmatmul.bf16.vlgmr.msrb.gmra.mxu0 %v1050_v40  ;;  %v6765_v33 = vld [vmem:[%s8612_s1 + $0x560] sm:$0xff]  ;;  %v6764_v40 = vld [vmem:[%s8612_s1 + $0x558] sm:$0xff] }
  0x82   :  { %4046 = vmatpush.bf16.msra.mxu0 %v6728_v36  ;;  %4015 = vmatmul.bf16.vlgmr.msrb.gmra.mxu1 %v1051_v42  ;;  %v6773_v36 = vld [vmem:[%s8612_s1 + $0x5a0] sm:$0xff]  ;;  %v6780_v42 = vld [vmem:[%s8612_s1 + $0x5d8] sm:$0xff] }
  0x83   :  { %4059 = vmatpush.bf16.msra.mxu1 %v6736_v37  ;;  %4028 = vmatmul.bf16.vlgmr.msrb.gmra.mxu2 %v1052_v41  ;;  %v6781_v37 = vld [vmem:[%s8612_s1 + $0x5e0] sm:$0xff]  ;;  %v6772_v41 = vld [vmem:[%s8612_s1 + $0x598] sm:$0xff] }
  0x84   :  { %4072 = vmatpush.bf16.msra.mxu2 %v6744_v38  ;;  %4041 = vmatmul.bf16.vlgmr.msrb.gmra.mxu3 %v1053_v43 }
  0x85   :  { %4085 = vmatpush.bf16.msra.mxu3 %v6752_v39  ;;  %v6756_v39 = vld [vmem:[%s8612_s1 + $0x518] sm:$0xff] }
  0x86   :  { %4047 = vmatpush.bf16.msra.mxu0 %v6727_v44 }
  0x87   :  { %4060 = vmatpush.bf16.msra.mxu1 %v6735_v45 }
  0x88   :  { %4073 = vmatpush.bf16.msra.mxu2 %v6743_v46 }
  0x89   :  { %4086 = vmatpush.bf16.msra.mxu3 %v6751_v47  ;;  %v6755_v47 = vld [vmem:[%s8612_s1 + $0x510] sm:$0xff] }
  0x8a   :  { %4048 = vmatpush.bf16.msra.mxu0 %v6726_v48  ;;  %v6763_v48 = vld [vmem:[%s8612_s1 + $0x550] sm:$0xff] }
  0x8b   :  { %4061 = vmatpush.bf16.msra.mxu1 %v6734_v49 }
  0x8c   :  { %4074 = vmatpush.bf16.msra.mxu2 %v6742_v50 }
  0x8d   :  { %4087 = vmatpush.bf16.msra.mxu3 %v6750_v51  ;;  %v6771_v51 = vld [vmem:[%s8612_s1 + $0x590] sm:$0xff] }
  0x8e   :  { %4049 = vmatpush.bf16.msra.mxu0 %v6725_v52  ;;  %v6779_v52 = vld [vmem:[%s8612_s1 + $0x5d0] sm:$0xff] }
  0x8f   :  { %4062 = vmatpush.bf16.msra.mxu1 %v6733_v53  ;;  %v6754_v53 = vld [vmem:[%s8612_s1 + $0x508] sm:$0xff] }
  0x90   :  { %4075 = vmatpush.bf16.msra.mxu2 %v6741_v54  ;;  %v6762_v54 = vld [vmem:[%s8612_s1 + $0x548] sm:$0xff] }
  0x91   :  { %4088 = vmatpush.bf16.msra.mxu3 %v6749_v55  ;;  %v6770_v55 = vld [vmem:[%s8612_s1 + $0x588] sm:$0xff] }
  0x92   :  { %4050 = vmatpush.bf16.msra.mxu0 %v6724_v56  ;;  %v6778_v56 = vld [vmem:[%s8612_s1 + $0x5c8] sm:$0xff] }
  0x93   :  { %4063 = vmatpush.bf16.msra.mxu1 %v6732_v57  ;;  %v36_v57 = vld [vmem:[%s8613_s0 + $0x50] sm:$0xff] }
  0x94   :  { %4076 = vmatpush.bf16.msra.mxu2 %v6740_v58  ;;  %v37_v58 = vld [vmem:[%s8613_s0 + $0x58] sm:$0xff] }
  0x95   :  { %4089 = vmatpush.bf16.msra.mxu3 %v6748_v59  ;;  %v1005_v4 = vunpack.c.h.b16 %v37_v58 }
  0x96   :  { %4051 = vmatpush.bf16.msra.mxu0 %v6723_v60 }
  0x97   :  { %4064 = vmatpush.bf16.msra.mxu1 %v6731_v61  ;;  %v6753_v61 = vld [vmem:[%s8612_s1 + $0x500] sm:$0xff]  ;;  %v1061_v12 = vpack.c.b16 %v1005_v4, %v1005_v4  ;;  %v6831_v4 = vld [vmem:[%s8612_s1 + $0x770] sm:$0xff] }
  0x98   :  { %4077 = vmatpush.bf16.msra.mxu2 %v6739_v62  ;;  %v6761_v62 = vld [vmem:[%s8612_s1 + $0x540] sm:$0xff] }
  0x99   :  { %4090 = vmatpush.bf16.msra.mxu3 %v6747_v63  ;;  %v1002_v63 = vunpack.c.l.b16 %v36_v57 }
  0x9a   :  { %4052 = vmatpush.bf16.msra.mxu0 %v6722_v0  ;;  %v1004_v0 = vunpack.c.l.b16 %v37_v58 }
  0x9b   :  { %4065 = vmatpush.bf16.msra.mxu1 %v6730_v1  ;;  %v6769_v1 = vld [vmem:[%s8612_s1 + $0x580] sm:$0xff]  ;;  %v1058_v9 = vpack.c.b16 %v1002_v63, %v1002_v63 }
  0x9c   :  { %4078 = vmatpush.bf16.msra.mxu2 %v6738_v2  ;;  %v6777_v2 = vld [vmem:[%s8612_s1 + $0x5c0] sm:$0xff] }
  0x9d   :  { %4091 = vmatpush.bf16.msra.mxu3 %v6746_v3  ;;  %v1003_v3 = vunpack.c.h.b16 %v36_v57 }
  0x9e   :  { %4053 = vmatpush.bf16.msra.mxu0 %v6721_v6  ;;  %v3847_v31 = vpop.f32.mrf.mxu0  ;;  %v6800_v6 = vld [vmem:[%s8612_s1 + $0x678] sm:$0xff] }
  0x9f   :  { %4066 = vmatpush.bf16.msra.mxu1 %v6729_v7  ;;  %v3848_v34 = vadd.f32 %v7057_v28, %v3847_v31  ;;  %v3860_v35 = vpop.f32.mrf.mxu1  ;;  %v6808_v7 = vld [vmem:[%s8612_s1 + $0x6b8] sm:$0xff] }
  0xa0   :  { %4079 = vmatpush.bf16.msra.mxu2 %v6737_v10  ;;  %v1060_v10 = vpack.c.b16 %v1004_v0, %v1004_v0  ;;  %v6804_v31 = vld [vmem:[%s8612_s1 + $0x698] sm:$0xff] }
  0xa1   :  { %4092 = vmatpush.bf16.msra.mxu3 %v6745_v11  ;;  %4054 = vmatmul.bf16.vlgmr.msra.gmra.mxu0 %v1054_v18  ;;  %v3861_v38 = vadd.f32 %v3860_v35, %v3848_v34  ;;  %v1059_v11 = vpack.c.b16 %v1003_v3, %v1003_v3  ;;  %v6798_v18 = vld [vmem:[%s8612_s1 + $0x668] sm:$0xff]  ;;  %v6823_v3 = vld [vmem:[%s8612_s1 + $0x730] sm:$0xff] }
  0xa2   :  { %4098 = vmatpush.bf16.msrb.mxu0 %v6760_v14  ;;  %4067 = vmatmul.bf16.vlgmr.msra.gmra.mxu1 %v1055_v20  ;;  %v6799_v14 = vld [vmem:[%s8612_s1 + $0x670] sm:$0xff]  ;;  %v6814_v20 = vld [vmem:[%s8612_s1 + $0x6e8] sm:$0xff] }
  0xa3   :  { %4111 = vmatpush.bf16.msrb.mxu1 %v6768_v15  ;;  %4080 = vmatmul.bf16.vlgmr.msra.gmra.mxu2 %v1056_v19  ;;  %v6807_v15 = vld [vmem:[%s8612_s1 + $0x6b0] sm:$0xff]  ;;  %v6806_v19 = vld [vmem:[%s8612_s1 + $0x6a8] sm:$0xff] }
  0xa4   :  { %4124 = vmatpush.bf16.msrb.mxu2 %v6776_v16  ;;  %4093 = vmatmul.bf16.vlgmr.msra.gmra.mxu3 %v1057_v21  ;;  %v6815_v16 = vld [vmem:[%s8612_s1 + $0x6f0] sm:$0xff] }
  0xa5   :  { %4137 = vmatpush.bf16.msrb.mxu3 %v6784_v17  ;;  %v6790_v17 = vld [vmem:[%s8612_s1 + $0x628] sm:$0xff] }
  0xa6   :  { %4099 = vmatpush.bf16.msrb.mxu0 %v6759_v22  ;;  %v3873_v43 = vpop.f32.mrf.mxu2  ;;  %v3849_v46 = vpop.f32.mrf.mxu0  ;;  %v6789_v22 = vld [vmem:[%s8612_s1 + $0x620] sm:$0xff] }
  0xa7   :  { %4112 = vmatpush.bf16.msrb.mxu1 %v6767_v23  ;;  %v3874_v44 = vadd.f32 %v3873_v43, %v3861_v38  ;;  %v3886_v45 = vpop.f32.mrf.mxu3  ;;  %v3862_v50 = vpop.f32.mrf.mxu1  ;;  %v6797_v23 = vld [vmem:[%s8612_s1 + $0x660] sm:$0xff]  ;;  %v6795_v38 = vld [vmem:[%s8612_s1 + $0x650] sm:$0xff]  ;;  %v6786_v43 = vld [vmem:[%s8612_s1 + $0x608] sm:$0xff] }
  0xa8   :  { %4125 = vmatpush.bf16.msrb.mxu2 %v6775_v24  ;;  %v6810_v46 = vld [vmem:[%s8612_s1 + $0x6c8] sm:$0xff] }
  0xa9   :  { %4138 = vmatpush.bf16.msrb.mxu3 %v6783_v25  ;;  %v7679_v49 = vadd.f32 %v3886_v45, %v3874_v44  ;;  %v6794_v44 = vld [vmem:[%s8612_s1 + $0x648] sm:$0xff] }
  0xaa   :  { %4100 = vmatpush.bf16.msrb.mxu0 %v6758_v26  ;;  %v6805_v26 = vld [vmem:[%s8612_s1 + $0x6a0] sm:$0xff]  ;;  %v6802_v45 = vld [vmem:[%s8612_s1 + $0x688] sm:$0xff] }
  0xab   :  { %4113 = vmatpush.bf16.msrb.mxu1 %v6766_v27  ;;  %v6813_v27 = vld [vmem:[%s8612_s1 + $0x6e0] sm:$0xff] }
  0xac   :  { %4126 = vmatpush.bf16.msrb.mxu2 %v6774_v29  ;;  %v6788_v29 = vld [vmem:[%s8612_s1 + $0x618] sm:$0xff] }
  0xad   :  { %4139 = vmatpush.bf16.msrb.mxu3 %v6782_v30  ;;  %v6796_v30 = vld [vmem:[%s8612_s1 + $0x658] sm:$0xff] }
  0xae   :  { %4101 = vmatpush.bf16.msrb.mxu0 %v6757_v32  ;;  %v3875_v59 = vpop.f32.mrf.mxu2  ;;  %v6812_v32 = vld [vmem:[%s8612_s1 + $0x6d8] sm:$0xff] }
  0xaf   :  { %4114 = vmatpush.bf16.msrb.mxu1 %v6765_v33  ;;  %v3888_v60 = vpop.f32.mrf.mxu3  ;;  %v6824_v59 = vld [vmem:[%s8612_s1 + $0x738] sm:$0xff] }
  0xb0   :  { %4127 = vmatpush.bf16.msrb.mxu2 %v6773_v36  ;;  %v6832_v60 = vld [vmem:[%s8612_s1 + $0x778] sm:$0xff] }
  0xb1   :  { %4140 = vmatpush.bf16.msrb.mxu3 %v6781_v37  ;;  %v6787_v37 = vld [vmem:[%s8612_s1 + $0x610] sm:$0xff] }
  0xb2   :  { %4102 = vmatpush.bf16.msrb.mxu0 %v6756_v39 }
  0xb3   :  { %4115 = vmatpush.bf16.msrb.mxu1 %v6764_v40 }
  0xb4   :  { %4128 = vmatpush.bf16.msrb.mxu2 %v6772_v41  ;;  %v6803_v41 = vld [vmem:[%s8612_s1 + $0x690] sm:$0xff] }
  0xb5   :  { %4141 = vmatpush.bf16.msrb.mxu3 %v6780_v42  ;;  %v6811_v42 = vld [vmem:[%s8612_s1 + $0x6d0] sm:$0xff] }
  0xb6   :  { %4103 = vmatpush.bf16.msrb.mxu0 %v6755_v47  ;;  %v38_v47 = vld [vmem:[%s8613_s0 + $0x60] sm:$0xff] }
  0xb7   :  { %4116 = vmatpush.bf16.msrb.mxu1 %v6763_v48  ;;  %v39_v48 = vld [vmem:[%s8613_s0 + $0x68] sm:$0xff]  ;;  %v1007_v57 = vunpack.c.h.b16 %v38_v47 }
  0xb8   :  { %4129 = vmatpush.bf16.msrb.mxu2 %v6771_v51  ;;  %v6785_v51 = vld [vmem:[%s8612_s1 + $0x600] sm:$0xff]  ;;  %v1009_v58 = vunpack.c.h.b16 %v39_v48 }
  0xb9   :  { %4142 = vmatpush.bf16.msrb.mxu3 %v6779_v52  ;;  %v6793_v52 = vld [vmem:[%s8612_s1 + $0x640] sm:$0xff] }
  0xba   :  { %4104 = vmatpush.bf16.msrb.mxu0 %v6754_v53  ;;  %v1006_v53 = vunpack.c.l.b16 %v38_v47 }
  0xbb   :  { %4117 = vmatpush.bf16.msrb.mxu1 %v6762_v54  ;;  %v1008_v54 = vunpack.c.l.b16 %v39_v48 }
  0xbc   :  { %4130 = vmatpush.bf16.msrb.mxu2 %v6770_v55  ;;  %v6801_v55 = vld [vmem:[%s8612_s1 + $0x680] sm:$0xff]  ;;  %v1062_v63 = vpack.c.b16 %v1006_v53, %v1006_v53 }
  0xbd   :  { %4143 = vmatpush.bf16.msrb.mxu3 %v6778_v56  ;;  %v6809_v56 = vld [vmem:[%s8612_s1 + $0x6c0] sm:$0xff]  ;;  %v1064_v0 = vpack.c.b16 %v1008_v54, %v1008_v54 }
  0xbe   :  { %4105 = vmatpush.bf16.msrb.mxu0 %v6753_v61  ;;  %v3899_v21 = vpop.f32.mrf.mxu0  ;;  %v6840_v61 = vld [vmem:[%s8612_s1 + $0x7b8] sm:$0xff] }
  0xbf   :  { %4118 = vmatpush.bf16.msrb.mxu1 %v6761_v62  ;;  %v3900_v24 = vadd.f32 %v3899_v21, %v7679_v49  ;;  %v3912_v25 = vpop.f32.mrf.mxu1  ;;  %v6848_v62 = vld [vmem:[%s8612_s1 + $0x7f8] sm:$0xff] }
  0xc0   :  { %4131 = vmatpush.bf16.msrb.mxu2 %v6769_v1  ;;  %v1063_v1 = vpack.c.b16 %v1007_v57, %v1007_v57  ;;  %v6836_v21 = vld [vmem:[%s8612_s1 + $0x798] sm:$0xff]  ;;  %v6855_v57 = vld [vmem:[%s8612_s1 + $0x830] sm:$0xff] }
  0xc1   :  { %4144 = vmatpush.bf16.msrb.mxu3 %v6777_v2  ;;  %4106 = vmatmul.bf16.vlgmr.msrb.gmra.mxu0 %v1058_v9  ;;  %v3913_v28 = vadd.f32 %v3912_v25, %v3900_v24  ;;  %v1065_v2 = vpack.c.b16 %v1009_v58, %v1009_v58  ;;  %v6838_v9 = vld [vmem:[%s8612_s1 + $0x7a8] sm:$0xff]  ;;  %v6863_v58 = vld [vmem:[%s8612_s1 + $0x870] sm:$0xff] }
  0xc2   :  { %4150 = vmatpush.bf16.msra.mxu0 %v6792_v5  ;;  %4119 = vmatmul.bf16.vlgmr.msrb.gmra.mxu1 %v1059_v11  ;;  %v6839_v5 = vld [vmem:[%s8612_s1 + $0x7b0] sm:$0xff] }
  0xc3   :  { %4163 = vmatpush.bf16.msra.mxu1 %v6800_v6  ;;  %4132 = vmatmul.bf16.vlgmr.msrb.gmra.mxu2 %v1060_v10  ;;  %v6847_v6 = vld [vmem:[%s8612_s1 + $0x7f0] sm:$0xff]  ;;  %v6846_v10 = vld [vmem:[%s8612_s1 + $0x7e8] sm:$0xff] }
  0xc4   :  { %4176 = vmatpush.bf16.msra.mxu2 %v6808_v7  ;;  %4145 = vmatmul.bf16.vlgmr.msrb.gmra.mxu3 %v1061_v12  ;;  %v6822_v7 = vld [vmem:[%s8612_s1 + $0x728] sm:$0xff] }
  0xc5   :  { %4189 = vmatpush.bf16.msra.mxu3 %v6816_v8  ;;  %v6830_v8 = vld [vmem:[%s8612_s1 + $0x768] sm:$0xff] }
  0xc6   :  { %4151 = vmatpush.bf16.msra.mxu0 %v6791_v13  ;;  %v3925_v33 = vpop.f32.mrf.mxu2  ;;  %v3901_v36 = vpop.f32.mrf.mxu0  ;;  %v6821_v13 = vld [vmem:[%s8612_s1 + $0x720] sm:$0xff] }
  0xc7   :  { %4164 = vmatpush.bf16.msra.mxu1 %v6799_v14  ;;  %v3926_v34 = vadd.f32 %v3925_v33, %v3913_v28  ;;  %v3938_v35 = vpop.f32.mrf.mxu3  ;;  %v3914_v40 = vpop.f32.mrf.mxu1  ;;  %v6829_v14 = vld [vmem:[%s8612_s1 + $0x760] sm:$0xff]  ;;  %v6819_v28 = vld [vmem:[%s8612_s1 + $0x710] sm:$0xff]  ;;  %v6818_v33 = vld [vmem:[%s8612_s1 + $0x708] sm:$0xff] }
  0xc8   :  { %4177 = vmatpush.bf16.msra.mxu2 %v6807_v15  ;;  %v6842_v36 = vld [vmem:[%s8612_s1 + $0x7c8] sm:$0xff] }
  0xc9   :  { %4190 = vmatpush.bf16.msra.mxu3 %v6815_v16  ;;  %v7784_v39 = vadd.f32 %v3938_v35, %v3926_v34  ;;  %v6837_v16 = vld [vmem:[%s8612_s1 + $0x7a0] sm:$0xff]  ;;  %v6826_v34 = vld [vmem:[%s8612_s1 + $0x748] sm:$0xff] }
  0xca   :  { %4152 = vmatpush.bf16.msra.mxu0 %v6790_v17  ;;  %v6845_v17 = vld [vmem:[%s8612_s1 + $0x7e0] sm:$0xff]  ;;  %v6834_v35 = vld [vmem:[%s8612_s1 + $0x788] sm:$0xff] }
  0xcb   :  { %4165 = vmatpush.bf16.msra.mxu1 %v6798_v18 }
  0xcc   :  { %4178 = vmatpush.bf16.msra.mxu2 %v6806_v19  ;;  %v6820_v19 = vld [vmem:[%s8612_s1 + $0x718] sm:$0xff] }
  0xcd   :  { %4191 = vmatpush.bf16.msra.mxu3 %v6814_v20  ;;  %v6828_v20 = vld [vmem:[%s8612_s1 + $0x758] sm:$0xff] }
  0xce   :  { %4153 = vmatpush.bf16.msra.mxu0 %v6789_v22  ;;  %v3927_v49 = vpop.f32.mrf.mxu2  ;;  %v6844_v22 = vld [vmem:[%s8612_s1 + $0x7d8] sm:$0xff] }
  0xcf   :  { %4166 = vmatpush.bf16.msra.mxu1 %v6797_v23  ;;  %v3940_v50 = vpop.f32.mrf.mxu3  ;;  %v6856_v49 = vld [vmem:[%s8612_s1 + $0x838] sm:$0xff] }
  0xd0   :  { %4179 = vmatpush.bf16.msra.mxu2 %v6805_v26  ;;  %v6864_v50 = vld [vmem:[%s8612_s1 + $0x878] sm:$0xff] }
  0xd1   :  { %4192 = vmatpush.bf16.msra.mxu3 %v6813_v27 }
  0xd2   :  { %4154 = vmatpush.bf16.msra.mxu0 %v6788_v29  ;;  %v6827_v29 = vld [vmem:[%s8612_s1 + $0x750] sm:$0xff] }
  0xd3   :  { %4167 = vmatpush.bf16.msra.mxu1 %v6796_v30 }
  0xd4   :  { %4180 = vmatpush.bf16.msra.mxu2 %v6804_v31  ;;  %v6835_v31 = vld [vmem:[%s8612_s1 + $0x790] sm:$0xff] }
  0xd5   :  { %4193 = vmatpush.bf16.msra.mxu3 %v6812_v32  ;;  %v6843_v32 = vld [vmem:[%s8612_s1 + $0x7d0] sm:$0xff] }
  0xd6   :  { %4155 = vmatpush.bf16.msra.mxu0 %v6787_v37  ;;  %v40_v37 = vld [vmem:[%s8613_s0 + $0x70] sm:$0xff] }
  0xd7   :  { %4168 = vmatpush.bf16.msra.mxu1 %v6795_v38  ;;  %v41_v38 = vld [vmem:[%s8613_s0 + $0x78] sm:$0xff]  ;;  %v1011_v47 = vunpack.c.h.b16 %v40_v37 }
  0xd8   :  { %4181 = vmatpush.bf16.msra.mxu2 %v6803_v41  ;;  %v6817_v41 = vld [vmem:[%s8612_s1 + $0x700] sm:$0xff]  ;;  %v1013_v48 = vunpack.c.h.b16 %v41_v38 }
  0xd9   :  { %4194 = vmatpush.bf16.msra.mxu3 %v6811_v42  ;;  %v6825_v42 = vld [vmem:[%s8612_s1 + $0x740] sm:$0xff] }
  0xda   :  { %4156 = vmatpush.bf16.msra.mxu0 %v6786_v43  ;;  %v1010_v43 = vunpack.c.l.b16 %v40_v37 }
  0xdb   :  { %4169 = vmatpush.bf16.msra.mxu1 %v6794_v44  ;;  %v1012_v44 = vunpack.c.l.b16 %v41_v38 }
  0xdc   :  { %4182 = vmatpush.bf16.msra.mxu2 %v6802_v45  ;;  %v6833_v45 = vld [vmem:[%s8612_s1 + $0x780] sm:$0xff]  ;;  %v1066_v53 = vpack.c.b16 %v1010_v43, %v1010_v43 }
  0xdd   :  { %4195 = vmatpush.bf16.msra.mxu3 %v6810_v46  ;;  %v6841_v46 = vld [vmem:[%s8612_s1 + $0x7c0] sm:$0xff]  ;;  %v1068_v54 = vpack.c.b16 %v1012_v44, %v1012_v44 }
  0xde   :  { %4157 = vmatpush.bf16.msra.mxu0 %v6785_v51  ;;  %v3951_v11 = vpop.f32.mrf.mxu0  ;;  %v6872_v51 = vld [vmem:[%s8612_s1 + $0x8b8] sm:$0xff] }
  0xdf   :  { %4170 = vmatpush.bf16.msra.mxu1 %v6793_v52  ;;  %v3952_v12 = vadd.f32 %v3951_v11, %v7784_v39  ;;  %v3964_v15 = vpop.f32.mrf.mxu1  ;;  %v6880_v52 = vld [vmem:[%s8612_s1 + $0x8f8] sm:$0xff] }
  0xe0   :  { %4183 = vmatpush.bf16.msra.mxu2 %v6801_v55  ;;  %v1067_v55 = vpack.c.b16 %v1011_v47, %v1011_v47  ;;  %v6868_v11 = vld [vmem:[%s8612_s1 + $0x898] sm:$0xff]  ;;  %v6887_v47 = vld [vmem:[%s8612_s1 + $0x930] sm:$0xff] }
  0xe1   :  { %4196 = vmatpush.bf16.msra.mxu3 %v6809_v56  ;;  %4158 = vmatmul.bf16.vlgmr.msra.gmra.mxu0 %v1062_v63  ;;  %v3965_v18 = vadd.f32 %v3964_v15, %v3952_v12  ;;  %v1069_v56 = vpack.c.b16 %v1013_v48, %v1013_v48  ;;  %v6870_v63 = vld [vmem:[%s8612_s1 + $0x8a8] sm:$0xff]  ;;  %v6876_v12 = vld [vmem:[%s8612_s1 + $0x8d8] sm:$0xff]  ;;  %v6895_v48 = vld [vmem:[%s8612_s1 + $0x970] sm:$0xff] }
  0xe2   :  { %4202 = vmatpush.bf16.msrb.mxu0 %v6824_v59  ;;  %4171 = vmatmul.bf16.vlgmr.msra.gmra.mxu1 %v1063_v1  ;;  %v6871_v59 = vld [vmem:[%s8612_s1 + $0x8b0] sm:$0xff] }
  0xe3   :  { %4215 = vmatpush.bf16.msrb.mxu1 %v6832_v60  ;;  %4184 = vmatmul.bf16.vlgmr.msra.gmra.mxu2 %v1064_v0  ;;  %v6879_v60 = vld [vmem:[%s8612_s1 + $0x8f0] sm:$0xff]  ;;  %v6878_v0 = vld [vmem:[%s8612_s1 + $0x8e8] sm:$0xff] }
  0xe4   :  { %4228 = vmatpush.bf16.msrb.mxu2 %v6840_v61  ;;  %4197 = vmatmul.bf16.vlgmr.msra.gmra.mxu3 %v1065_v2  ;;  %v6854_v61 = vld [vmem:[%s8612_s1 + $0x828] sm:$0xff] }
  0xe5   :  { %4241 = vmatpush.bf16.msrb.mxu3 %v6848_v62  ;;  %v6862_v62 = vld [vmem:[%s8612_s1 + $0x868] sm:$0xff] }
  0xe6   :  { %4203 = vmatpush.bf16.msrb.mxu0 %v6823_v3  ;;  %v3977_v23 = vpop.f32.mrf.mxu2  ;;  %v3953_v26 = vpop.f32.mrf.mxu0  ;;  %v6853_v3 = vld [vmem:[%s8612_s1 + $0x820] sm:$0xff] }
  0xe7   :  { %4216 = vmatpush.bf16.msrb.mxu1 %v6831_v4  ;;  %v3978_v24 = vadd.f32 %v3977_v23, %v3965_v18  ;;  %v3990_v25 = vpop.f32.mrf.mxu3  ;;  %v3966_v30 = vpop.f32.mrf.mxu1  ;;  %v6861_v4 = vld [vmem:[%s8612_s1 + $0x860] sm:$0xff]  ;;  %v6851_v18 = vld [vmem:[%s8612_s1 + $0x810] sm:$0xff]  ;;  %v6850_v23 = vld [vmem:[%s8612_s1 + $0x808] sm:$0xff] }
  0xe8   :  { %4229 = vmatpush.bf16.msrb.mxu2 %v6839_v5  ;;  %v6874_v26 = vld [vmem:[%s8612_s1 + $0x8c8] sm:$0xff] }
  0xe9   :  { %4242 = vmatpush.bf16.msrb.mxu3 %v6847_v6  ;;  %v7883_v27 = vadd.f32 %v3990_v25, %v3978_v24  ;;  %v6869_v6 = vld [vmem:[%s8612_s1 + $0x8a0] sm:$0xff]  ;;  %v6858_v24 = vld [vmem:[%s8612_s1 + $0x848] sm:$0xff] }
  0xea   :  { %4204 = vmatpush.bf16.msrb.mxu0 %v6822_v7  ;;  %v6877_v7 = vld [vmem:[%s8612_s1 + $0x8e0] sm:$0xff]  ;;  %v6866_v25 = vld [vmem:[%s8612_s1 + $0x888] sm:$0xff] }
  0xeb   :  { %4217 = vmatpush.bf16.msrb.mxu1 %v6830_v8 }
  0xec   :  { %4230 = vmatpush.bf16.msrb.mxu2 %v6838_v9  ;;  %v6852_v9 = vld [vmem:[%s8612_s1 + $0x818] sm:$0xff] }
  0xed   :  { %4243 = vmatpush.bf16.msrb.mxu3 %v6846_v10  ;;  %v6860_v10 = vld [vmem:[%s8612_s1 + $0x858] sm:$0xff] }
  0xee   :  { %4205 = vmatpush.bf16.msrb.mxu0 %v6821_v13  ;;  %v3979_v39 = vpop.f32.mrf.mxu2 }
  0xef   :  { %4218 = vmatpush.bf16.msrb.mxu1 %v6829_v14  ;;  %v3992_v40 = vpop.f32.mrf.mxu3  ;;  %v6888_v39 = vld [vmem:[%s8612_s1 + $0x938] sm:$0xff] }
  0xf0   :  { %4231 = vmatpush.bf16.msrb.mxu2 %v6837_v16  ;;  %v6896_v40 = vld [vmem:[%s8612_s1 + $0x978] sm:$0xff] }
  0xf1   :  { %4244 = vmatpush.bf16.msrb.mxu3 %v6845_v17 }
  0xf2   :  { %4206 = vmatpush.bf16.msrb.mxu0 %v6820_v19  ;;  %v6859_v19 = vld [vmem:[%s8612_s1 + $0x850] sm:$0xff] }
  0xf3   :  { %4219 = vmatpush.bf16.msrb.mxu1 %v6828_v20 }
  0xf4   :  { %4232 = vmatpush.bf16.msrb.mxu2 %v6836_v21  ;;  %v6867_v21 = vld [vmem:[%s8612_s1 + $0x890] sm:$0xff] }
  0xf5   :  { %4245 = vmatpush.bf16.msrb.mxu3 %v6844_v22  ;;  %v6875_v22 = vld [vmem:[%s8612_s1 + $0x8d0] sm:$0xff] }
  0xf6   :  { %4207 = vmatpush.bf16.msrb.mxu0 %v6819_v28  ;;  %v43_v28 = vld [vmem:[%s8613_s0 + $0x88] sm:$0xff] }
  0xf7   :  { %4220 = vmatpush.bf16.msrb.mxu1 %v6827_v29  ;;  %v1017_v38 = vunpack.c.h.b16 %v43_v28 }
  0xf8   :  { %4233 = vmatpush.bf16.msrb.mxu2 %v6835_v31  ;;  %v6849_v31 = vld [vmem:[%s8612_s1 + $0x800] sm:$0xff] }
  0xf9   :  { %4246 = vmatpush.bf16.msrb.mxu3 %v6843_v32  ;;  %v6857_v32 = vld [vmem:[%s8612_s1 + $0x840] sm:$0xff] }
  0xfa   :  { %4208 = vmatpush.bf16.msrb.mxu0 %v6818_v33 }
  0xfb   :  { %4221 = vmatpush.bf16.msrb.mxu1 %v6826_v34  ;;  %v1016_v34 = vunpack.c.l.b16 %v43_v28 }
  0xfc   :  { %4234 = vmatpush.bf16.msrb.mxu2 %v6834_v35  ;;  %v6865_v35 = vld [vmem:[%s8612_s1 + $0x880] sm:$0xff] }
  0xfd   :  { %4247 = vmatpush.bf16.msrb.mxu3 %v6842_v36  ;;  %v6873_v36 = vld [vmem:[%s8612_s1 + $0x8c0] sm:$0xff]  ;;  %v1072_v44 = vpack.c.b16 %v1016_v34, %v1016_v34 }
  0xfe   :  { %4209 = vmatpush.bf16.msrb.mxu0 %v6817_v41  ;;  %v4003_v1 = vpop.f32.mrf.mxu0  ;;  %v6904_v41 = vld [vmem:[%s8612_s1 + $0x9b8] sm:$0xff] }
  0xff   :  { %4222 = vmatpush.bf16.msrb.mxu1 %v6825_v42  ;;  %v4004_v2 = vadd.f32 %v4003_v1, %v7883_v27  ;;  %v4016_v5 = vpop.f32.mrf.mxu1  ;;  %v42_v27 = vld [vmem:[%s8613_s0 + $0x80] sm:$0xff]  ;;  %v6912_v42 = vld [vmem:[%s8612_s1 + $0x9f8] sm:$0xff] }
 0x100   :  { %4235 = vmatpush.bf16.msrb.mxu2 %v6833_v45  ;;  %v1014_v33 = vunpack.c.l.b16 %v42_v27  ;;  %v1015_v37 = vunpack.c.h.b16 %v42_v27  ;;  %v6900_v1 = vld [vmem:[%s8612_s1 + $0x998] sm:$0xff] }
 0x101   :  { %4248 = vmatpush.bf16.msrb.mxu3 %v6841_v46  ;;  %4210 = vmatmul.bf16.vlgmr.msrb.gmra.mxu0 %v1066_v53  ;;  %v4017_v8 = vadd.f32 %v4016_v5, %v4004_v2  ;;  %v1073_v46 = vpack.c.b16 %v1017_v38, %v1017_v38  ;;  %v6902_v53 = vld [vmem:[%s8612_s1 + $0x9a8] sm:$0xff]  ;;  %v6908_v2 = vld [vmem:[%s8612_s1 + $0x9d8] sm:$0xff]  ;;  %v6927_v38 = vld [vmem:[%s8612_s1 + $0xa70] sm:$0xff] }
 0x102   :  { %4254 = vmatpush.bf16.msra.mxu0 %v6856_v49  ;;  %4223 = vmatmul.bf16.vlgmr.msrb.gmra.mxu1 %v1067_v55  ;;  %v1070_v43 = vpack.c.b16 %v1014_v33, %v1014_v33  ;;  %v1071_v45 = vpack.c.b16 %v1015_v37, %v1015_v37  ;;  %v6903_v49 = vld [vmem:[%s8612_s1 + $0x9b0] sm:$0xff] }
 0x103   :  { %4267 = vmatpush.bf16.msra.mxu1 %v6864_v50  ;;  %4236 = vmatmul.bf16.vlgmr.msrb.gmra.mxu2 %v1068_v54  ;;  %v6911_v50 = vld [vmem:[%s8612_s1 + $0x9f0] sm:$0xff]  ;;  %v6910_v54 = vld [vmem:[%s8612_s1 + $0x9e8] sm:$0xff] }
 0x104   :  { %4280 = vmatpush.bf16.msra.mxu2 %v6872_v51  ;;  %4249 = vmatmul.bf16.vlgmr.msrb.gmra.mxu3 %v1069_v56  ;;  %v6886_v51 = vld [vmem:[%s8612_s1 + $0x928] sm:$0xff]  ;;  %v6919_v37 = vld [vmem:[%s8612_s1 + $0xa30] sm:$0xff] }
 0x105   :  { %4293 = vmatpush.bf16.msra.mxu3 %v6880_v52  ;;  %v6894_v52 = vld [vmem:[%s8612_s1 + $0x968] sm:$0xff] }
 0x106   :  { %4255 = vmatpush.bf16.msra.mxu0 %v6855_v57  ;;  %v4029_v13 = vpop.f32.mrf.mxu2  ;;  %v4005_v16 = vpop.f32.mrf.mxu0  ;;  %v6885_v57 = vld [vmem:[%s8612_s1 + $0x920] sm:$0xff] }
 0x107   :  { %4268 = vmatpush.bf16.msra.mxu1 %v6863_v58  ;;  %v4030_v14 = vadd.f32 %v4029_v13, %v4017_v8  ;;  %v4042_v15 = vpop.f32.mrf.mxu3  ;;  %v4018_v20 = vpop.f32.mrf.mxu1  ;;  %v6893_v58 = vld [vmem:[%s8612_s1 + $0x960] sm:$0xff]  ;;  %v6883_v8 = vld [vmem:[%s8612_s1 + $0x910] sm:$0xff]  ;;  %v6882_v13 = vld [vmem:[%s8612_s1 + $0x908] sm:$0xff] }
 0x108   :  { %4281 = vmatpush.bf16.msra.mxu2 %v6871_v59  ;;  %v6906_v16 = vld [vmem:[%s8612_s1 + $0x9c8] sm:$0xff] }
 0x109   :  { %4294 = vmatpush.bf16.msra.mxu3 %v6879_v60  ;;  %v7988_v17 = vadd.f32 %v4042_v15, %v4030_v14  ;;  %v6901_v60 = vld [vmem:[%s8612_s1 + $0x9a0] sm:$0xff]  ;;  %v6890_v14 = vld [vmem:[%s8612_s1 + $0x948] sm:$0xff] }
 0x10a   :  { %4256 = vmatpush.bf16.msra.mxu0 %v6854_v61  ;;  %v6909_v61 = vld [vmem:[%s8612_s1 + $0x9e0] sm:$0xff]  ;;  %v6898_v15 = vld [vmem:[%s8612_s1 + $0x988] sm:$0xff] }
 0x10b   :  { %4269 = vmatpush.bf16.msra.mxu1 %v6862_v62 }
 0x10c   :  { %4282 = vmatpush.bf16.msra.mxu2 %v6870_v63  ;;  %v6884_v63 = vld [vmem:[%s8612_s1 + $0x918] sm:$0xff] }
 0x10d   :  { %4295 = vmatpush.bf16.msra.mxu3 %v6878_v0  ;;  %v6892_v0 = vld [vmem:[%s8612_s1 + $0x958] sm:$0xff] }
 0x10e   :  { %4257 = vmatpush.bf16.msra.mxu0 %v6853_v3  ;;  %v4031_v29 = vpop.f32.mrf.mxu2 }
 0x10f   :  { %4270 = vmatpush.bf16.msra.mxu1 %v6861_v4  ;;  %v4044_v30 = vpop.f32.mrf.mxu3  ;;  %v6920_v29 = vld [vmem:[%s8612_s1 + $0xa38] sm:$0xff] }
 0x110   :  { %4283 = vmatpush.bf16.msra.mxu2 %v6869_v6  ;;  %v6928_v30 = vld [vmem:[%s8612_s1 + $0xa78] sm:$0xff] }
 0x111   :  { %4296 = vmatpush.bf16.msra.mxu3 %v6877_v7 }
 0x112   :  { %4258 = vmatpush.bf16.msra.mxu0 %v6852_v9  ;;  %v6891_v9 = vld [vmem:[%s8612_s1 + $0x950] sm:$0xff] }
 0x113   :  { %4271 = vmatpush.bf16.msra.mxu1 %v6860_v10 }
 0x114   :  { %4284 = vmatpush.bf16.msra.mxu2 %v6868_v11  ;;  %v6899_v11 = vld [vmem:[%s8612_s1 + $0x990] sm:$0xff] }
 0x115   :  { %4297 = vmatpush.bf16.msra.mxu3 %v6876_v12  ;;  %v6907_v12 = vld [vmem:[%s8612_s1 + $0x9d0] sm:$0xff] }
 0x116   :  { %4259 = vmatpush.bf16.msra.mxu0 %v6851_v18  ;;  %v45_v18 = vld [vmem:[%s8613_s0 + $0x98] sm:$0xff] }
 0x117   :  { %4272 = vmatpush.bf16.msra.mxu1 %v6859_v19  ;;  %v1021_v28 = vunpack.c.h.b16 %v45_v18 }
 0x118   :  { %4285 = vmatpush.bf16.msra.mxu2 %v6867_v21  ;;  %v6881_v21 = vld [vmem:[%s8612_s1 + $0x900] sm:$0xff] }
 0x119   :  { %4298 = vmatpush.bf16.msra.mxu3 %v6875_v22  ;;  %v6889_v22 = vld [vmem:[%s8612_s1 + $0x940] sm:$0xff] }
 0x11a   :  { %4260 = vmatpush.bf16.msra.mxu0 %v6850_v23 }
 0x11b   :  { %4273 = vmatpush.bf16.msra.mxu1 %v6858_v24  ;;  %v1020_v24 = vunpack.c.l.b16 %v45_v18 }
 0x11c   :  { %4286 = vmatpush.bf16.msra.mxu2 %v6866_v25  ;;  %v6897_v25 = vld [vmem:[%s8612_s1 + $0x980] sm:$0xff] }
 0x11d   :  { %4299 = vmatpush.bf16.msra.mxu3 %v6874_v26  ;;  %v6905_v26 = vld [vmem:[%s8612_s1 + $0x9c0] sm:$0xff]  ;;  %v1076_v34 = vpack.c.b16 %v1020_v24, %v1020_v24 }
 0x11e   :  { %4261 = vmatpush.bf16.msra.mxu0 %v6849_v31  ;;  %v4055_v55 = vpop.f32.mrf.mxu0  ;;  %v6936_v31 = vld [vmem:[%s8612_s1 + $0xab8] sm:$0xff] }
 0x11f   :  { %4274 = vmatpush.bf16.msra.mxu1 %v6857_v32  ;;  %v4056_v56 = vadd.f32 %v4055_v55, %v7988_v17  ;;  %v4068_v59 = vpop.f32.mrf.mxu1  ;;  %v44_v17 = vld [vmem:[%s8613_s0 + $0x90] sm:$0xff]  ;;  %v6944_v32 = vld [vmem:[%s8612_s1 + $0xaf8] sm:$0xff] }
 0x120   :  { %4287 = vmatpush.bf16.msra.mxu2 %v6865_v35  ;;  %v1018_v23 = vunpack.c.l.b16 %v44_v17  ;;  %v1019_v27 = vunpack.c.h.b16 %v44_v17  ;;  %v6932_v55 = vld [vmem:[%s8612_s1 + $0xa98] sm:$0xff] }
 0x121   :  { %4300 = vmatpush.bf16.msra.mxu3 %v6873_v36  ;;  %4262 = vmatmul.bf16.vlgmr.msra.gmra.mxu0 %v1070_v43  ;;  %v4069_v62 = vadd.f32 %v4068_v59, %v4056_v56  ;;  %v1077_v36 = vpack.c.b16 %v1021_v28, %v1021_v28  ;;  %v6934_v43 = vld [vmem:[%s8612_s1 + $0xaa8] sm:$0xff]  ;;  %v6940_v56 = vld [vmem:[%s8612_s1 + $0xad8] sm:$0xff]  ;;  %v6959_v28 = vld [vmem:[%s8612_s1 + $0xb70] sm:$0xff] }
 0x122   :  { %4306 = vmatpush.bf16.msrb.mxu0 %v6888_v39  ;;  %4275 = vmatmul.bf16.vlgmr.msra.gmra.mxu1 %v1071_v45  ;;  %v1074_v33 = vpack.c.b16 %v1018_v23, %v1018_v23  ;;  %v1075_v35 = vpack.c.b16 %v1019_v27, %v1019_v27  ;;  %v6935_v39 = vld [vmem:[%s8612_s1 + $0xab0] sm:$0xff] }
 0x123   :  { %4319 = vmatpush.bf16.msrb.mxu1 %v6896_v40  ;;  %4288 = vmatmul.bf16.vlgmr.msra.gmra.mxu2 %v1072_v44  ;;  %v6943_v40 = vld [vmem:[%s8612_s1 + $0xaf0] sm:$0xff]  ;;  %v6942_v44 = vld [vmem:[%s8612_s1 + $0xae8] sm:$0xff] }
 0x124   :  { %4332 = vmatpush.bf16.msrb.mxu2 %v6904_v41  ;;  %4301 = vmatmul.bf16.vlgmr.msra.gmra.mxu3 %v1073_v46  ;;  %v6918_v41 = vld [vmem:[%s8612_s1 + $0xa28] sm:$0xff]  ;;  %v6951_v27 = vld [vmem:[%s8612_s1 + $0xb30] sm:$0xff] }
 0x125   :  { %4345 = vmatpush.bf16.msrb.mxu3 %v6912_v42  ;;  %v6926_v42 = vld [vmem:[%s8612_s1 + $0xa68] sm:$0xff] }
 0x126   :  { %4307 = vmatpush.bf16.msrb.mxu0 %v6887_v47  ;;  %v4081_v3 = vpop.f32.mrf.mxu2  ;;  %v4057_v6 = vpop.f32.mrf.mxu0  ;;  %v6917_v47 = vld [vmem:[%s8612_s1 + $0xa20] sm:$0xff] }
 0x127   :  { %4320 = vmatpush.bf16.msrb.mxu1 %v6895_v48  ;;  %v4082_v4 = vadd.f32 %v4081_v3, %v4069_v62  ;;  %v4094_v5 = vpop.f32.mrf.mxu3  ;;  %v4070_v10 = vpop.f32.mrf.mxu1  ;;  %v6925_v48 = vld [vmem:[%s8612_s1 + $0xa60] sm:$0xff]  ;;  %v6915_v62 = vld [vmem:[%s8612_s1 + $0xa10] sm:$0xff]  ;;  %v6914_v3 = vld [vmem:[%s8612_s1 + $0xa08] sm:$0xff] }
 0x128   :  { %4333 = vmatpush.bf16.msrb.mxu2 %v6903_v49  ;;  %v6938_v6 = vld [vmem:[%s8612_s1 + $0xac8] sm:$0xff] }
 0x129   :  { %4346 = vmatpush.bf16.msrb.mxu3 %v6911_v50  ;;  %v8093_v7 = vadd.f32 %v4094_v5, %v4082_v4  ;;  %v6933_v50 = vld [vmem:[%s8612_s1 + $0xaa0] sm:$0xff]  ;;  %v6922_v4 = vld [vmem:[%s8612_s1 + $0xa48] sm:$0xff] }
 0x12a   :  { %4308 = vmatpush.bf16.msrb.mxu0 %v6886_v51  ;;  %v6941_v51 = vld [vmem:[%s8612_s1 + $0xae0] sm:$0xff]  ;;  %v6930_v5 = vld [vmem:[%s8612_s1 + $0xa88] sm:$0xff] }
 0x12b   :  { %4321 = vmatpush.bf16.msrb.mxu1 %v6894_v52 }
 0x12c   :  { %4334 = vmatpush.bf16.msrb.mxu2 %v6902_v53  ;;  %v6916_v53 = vld [vmem:[%s8612_s1 + $0xa18] sm:$0xff] }
 0x12d   :  { %4347 = vmatpush.bf16.msrb.mxu3 %v6910_v54  ;;  %v6924_v54 = vld [vmem:[%s8612_s1 + $0xa58] sm:$0xff] }
 0x12e   :  { %4309 = vmatpush.bf16.msrb.mxu0 %v6885_v57  ;;  %v4083_v19 = vpop.f32.mrf.mxu2 }
 0x12f   :  { %4322 = vmatpush.bf16.msrb.mxu1 %v6893_v58  ;;  %v4096_v20 = vpop.f32.mrf.mxu3  ;;  %v6952_v19 = vld [vmem:[%s8612_s1 + $0xb38] sm:$0xff] }
 0x130   :  { %4335 = vmatpush.bf16.msrb.mxu2 %v6901_v60  ;;  %v6960_v20 = vld [vmem:[%s8612_s1 + $0xb78] sm:$0xff] }
 0x131   :  { %4348 = vmatpush.bf16.msrb.mxu3 %v6909_v61 }
 0x132   :  { %4310 = vmatpush.bf16.msrb.mxu0 %v6884_v63  ;;  %v6923_v63 = vld [vmem:[%s8612_s1 + $0xa50] sm:$0xff] }
 0x133   :  { %4323 = vmatpush.bf16.msrb.mxu1 %v6892_v0 }
 0x134   :  { %4336 = vmatpush.bf16.msrb.mxu2 %v6900_v1  ;;  %v6931_v1 = vld [vmem:[%s8612_s1 + $0xa90] sm:$0xff] }
 0x135   :  { %4349 = vmatpush.bf16.msrb.mxu3 %v6908_v2  ;;  %v6939_v2 = vld [vmem:[%s8612_s1 + $0xad0] sm:$0xff] }
 0x136   :  { %4311 = vmatpush.bf16.msrb.mxu0 %v6883_v8  ;;  %v47_v8 = vld [vmem:[%s8613_s0 + $0xa8] sm:$0xff] }
 0x137   :  { %4324 = vmatpush.bf16.msrb.mxu1 %v6891_v9  ;;  %v1025_v18 = vunpack.c.h.b16 %v47_v8 }
 0x138   :  { %4337 = vmatpush.bf16.msrb.mxu2 %v6899_v11  ;;  %v6913_v11 = vld [vmem:[%s8612_s1 + $0xa00] sm:$0xff] }
 0x139   :  { %4350 = vmatpush.bf16.msrb.mxu3 %v6907_v12  ;;  %v6921_v12 = vld [vmem:[%s8612_s1 + $0xa40] sm:$0xff] }
 0x13a   :  { %4312 = vmatpush.bf16.msrb.mxu0 %v6882_v13 }
 0x13b   :  { %4325 = vmatpush.bf16.msrb.mxu1 %v6890_v14  ;;  %v1024_v14 = vunpack.c.l.b16 %v47_v8 }
 0x13c   :  { %4338 = vmatpush.bf16.msrb.mxu2 %v6898_v15  ;;  %v6929_v15 = vld [vmem:[%s8612_s1 + $0xa80] sm:$0xff] }
 0x13d   :  { %4351 = vmatpush.bf16.msrb.mxu3 %v6906_v16  ;;  %v6937_v16 = vld [vmem:[%s8612_s1 + $0xac0] sm:$0xff]  ;;  %v1080_v24 = vpack.c.b16 %v1024_v14, %v1024_v14 }
 0x13e   :  { %4313 = vmatpush.bf16.msrb.mxu0 %v6881_v21  ;;  %v4107_v45 = vpop.f32.mrf.mxu0  ;;  %v6968_v21 = vld [vmem:[%s8612_s1 + $0xbb8] sm:$0xff] }
 0x13f   :  { %4326 = vmatpush.bf16.msrb.mxu1 %v6889_v22  ;;  %v4108_v46 = vadd.f32 %v4107_v45, %v8093_v7  ;;  %v4120_v49 = vpop.f32.mrf.mxu1  ;;  %v46_v7 = vld [vmem:[%s8613_s0 + $0xa0] sm:$0xff]  ;;  %v6976_v22 = vld [vmem:[%s8612_s1 + $0xbf8] sm:$0xff] }
 0x140   :  { %4339 = vmatpush.bf16.msrb.mxu2 %v6897_v25  ;;  %v1022_v13 = vunpack.c.l.b16 %v46_v7  ;;  %v1023_v17 = vunpack.c.h.b16 %v46_v7  ;;  %v6964_v45 = vld [vmem:[%s8612_s1 + $0xb98] sm:$0xff] }
 0x141   :  { %4352 = vmatpush.bf16.msrb.mxu3 %v6905_v26  ;;  %4314 = vmatmul.bf16.vlgmr.msrb.gmra.mxu0 %v1074_v33  ;;  %v4121_v52 = vadd.f32 %v4120_v49, %v4108_v46  ;;  %v1081_v26 = vpack.c.b16 %v1025_v18, %v1025_v18  ;;  %v6966_v33 = vld [vmem:[%s8612_s1 + $0xba8] sm:$0xff]  ;;  %v6972_v46 = vld [vmem:[%s8612_s1 + $0xbd8] sm:$0xff]  ;;  %v6991_v18 = vld [vmem:[%s8612_s1 + $0xc70] sm:$0xff] }
 0x142   :  { %4358 = vmatpush.bf16.msra.mxu0 %v6920_v29  ;;  %4327 = vmatmul.bf16.vlgmr.msrb.gmra.mxu1 %v1075_v35  ;;  %v1078_v23 = vpack.c.b16 %v1022_v13, %v1022_v13  ;;  %v1079_v25 = vpack.c.b16 %v1023_v17, %v1023_v17  ;;  %v6967_v29 = vld [vmem:[%s8612_s1 + $0xbb0] sm:$0xff] }
 0x143   :  { %4371 = vmatpush.bf16.msra.mxu1 %v6928_v30  ;;  %4340 = vmatmul.bf16.vlgmr.msrb.gmra.mxu2 %v1076_v34  ;;  %v6975_v30 = vld [vmem:[%s8612_s1 + $0xbf0] sm:$0xff]  ;;  %v6974_v34 = vld [vmem:[%s8612_s1 + $0xbe8] sm:$0xff] }
 0x144   :  { %4384 = vmatpush.bf16.msra.mxu2 %v6936_v31  ;;  %4353 = vmatmul.bf16.vlgmr.msrb.gmra.mxu3 %v1077_v36  ;;  %v6950_v31 = vld [vmem:[%s8612_s1 + $0xb28] sm:$0xff]  ;;  %v6983_v17 = vld [vmem:[%s8612_s1 + $0xc30] sm:$0xff] }
 0x145   :  { %4397 = vmatpush.bf16.msra.mxu3 %v6944_v32  ;;  %v6958_v32 = vld [vmem:[%s8612_s1 + $0xb68] sm:$0xff] }
 0x146   :  { %4359 = vmatpush.bf16.msra.mxu0 %v6919_v37  ;;  %v4133_v57 = vpop.f32.mrf.mxu2  ;;  %v4109_v60 = vpop.f32.mrf.mxu0  ;;  %v6949_v37 = vld [vmem:[%s8612_s1 + $0xb20] sm:$0xff] }
 0x147   :  { %4372 = vmatpush.bf16.msra.mxu1 %v6927_v38  ;;  %v4134_v58 = vadd.f32 %v4133_v57, %v4121_v52  ;;  %v4146_v59 = vpop.f32.mrf.mxu3  ;;  %v4122_v0 = vpop.f32.mrf.mxu1  ;;  %v6957_v38 = vld [vmem:[%s8612_s1 + $0xb60] sm:$0xff]  ;;  %v6947_v52 = vld [vmem:[%s8612_s1 + $0xb10] sm:$0xff]  ;;  %v6946_v57 = vld [vmem:[%s8612_s1 + $0xb08] sm:$0xff] }
 0x148   :  { %4385 = vmatpush.bf16.msra.mxu2 %v6935_v39  ;;  %v6970_v60 = vld [vmem:[%s8612_s1 + $0xbc8] sm:$0xff] }
 0x149   :  { %4398 = vmatpush.bf16.msra.mxu3 %v6943_v40  ;;  %v8198_v61 = vadd.f32 %v4146_v59, %v4134_v58  ;;  %v6965_v40 = vld [vmem:[%s8612_s1 + $0xba0] sm:$0xff]  ;;  %v6954_v58 = vld [vmem:[%s8612_s1 + $0xb48] sm:$0xff] }
 0x14a   :  { %4360 = vmatpush.bf16.msra.mxu0 %v6918_v41  ;;  %v6973_v41 = vld [vmem:[%s8612_s1 + $0xbe0] sm:$0xff]  ;;  %v6962_v59 = vld [vmem:[%s8612_s1 + $0xb88] sm:$0xff] }
 0x14b   :  { %4373 = vmatpush.bf16.msra.mxu1 %v6926_v42 }
 0x14c   :  { %4386 = vmatpush.bf16.msra.mxu2 %v6934_v43  ;;  %v6948_v43 = vld [vmem:[%s8612_s1 + $0xb18] sm:$0xff] }
 0x14d   :  { %4399 = vmatpush.bf16.msra.mxu3 %v6942_v44  ;;  %v6956_v44 = vld [vmem:[%s8612_s1 + $0xb58] sm:$0xff] }
 0x14e   :  { %4361 = vmatpush.bf16.msra.mxu0 %v6917_v47  ;;  %v4135_v9 = vpop.f32.mrf.mxu2 }
 0x14f   :  { %4374 = vmatpush.bf16.msra.mxu1 %v6925_v48  ;;  %v4148_v10 = vpop.f32.mrf.mxu3  ;;  %v6984_v9 = vld [vmem:[%s8612_s1 + $0xc38] sm:$0xff] }
 0x150   :  { %4387 = vmatpush.bf16.msra.mxu2 %v6933_v50  ;;  %v6992_v10 = vld [vmem:[%s8612_s1 + $0xc78] sm:$0xff] }
 0x151   :  { %4400 = vmatpush.bf16.msra.mxu3 %v6941_v51 }
 0x152   :  { %4362 = vmatpush.bf16.msra.mxu0 %v6916_v53  ;;  %v6955_v53 = vld [vmem:[%s8612_s1 + $0xb50] sm:$0xff] }
 0x153   :  { %4375 = vmatpush.bf16.msra.mxu1 %v6924_v54 }
 0x154   :  { %4388 = vmatpush.bf16.msra.mxu2 %v6932_v55  ;;  %v6963_v55 = vld [vmem:[%s8612_s1 + $0xb90] sm:$0xff] }
 0x155   :  { %4401 = vmatpush.bf16.msra.mxu3 %v6940_v56  ;;  %v6971_v56 = vld [vmem:[%s8612_s1 + $0xbd0] sm:$0xff] }
 0x156   :  { %4363 = vmatpush.bf16.msra.mxu0 %v6915_v62  ;;  %v49_v62 = vld [vmem:[%s8613_s0 + $0xb8] sm:$0xff] }
 0x157   :  { %4376 = vmatpush.bf16.msra.mxu1 %v6923_v63  ;;  %v1029_v8 = vunpack.c.h.b16 %v49_v62 }
 0x158   :  { %4389 = vmatpush.bf16.msra.mxu2 %v6931_v1  ;;  %v6945_v1 = vld [vmem:[%s8612_s1 + $0xb00] sm:$0xff] }
 0x159   :  { %4402 = vmatpush.bf16.msra.mxu3 %v6939_v2  ;;  %v6953_v2 = vld [vmem:[%s8612_s1 + $0xb40] sm:$0xff] }
 0x15a   :  { %4364 = vmatpush.bf16.msra.mxu0 %v6914_v3 }
 0x15b   :  { %4377 = vmatpush.bf16.msra.mxu1 %v6922_v4  ;;  %v1028_v4 = vunpack.c.l.b16 %v49_v62 }
 0x15c   :  { %4390 = vmatpush.bf16.msra.mxu2 %v6930_v5  ;;  %v6961_v5 = vld [vmem:[%s8612_s1 + $0xb80] sm:$0xff] }
 0x15d   :  { %4403 = vmatpush.bf16.msra.mxu3 %v6938_v6  ;;  %v6969_v6 = vld [vmem:[%s8612_s1 + $0xbc0] sm:$0xff]  ;;  %v1084_v14 = vpack.c.b16 %v1028_v4, %v1028_v4 }
 0x15e   :  { %4365 = vmatpush.bf16.msra.mxu0 %v6913_v11  ;;  %v4159_v35 = vpop.f32.mrf.mxu0  ;;  %v7000_v11 = vld [vmem:[%s8612_s1 + $0xcb8] sm:$0xff] }
 0x15f   :  { %4378 = vmatpush.bf16.msra.mxu1 %v6921_v12  ;;  %v4160_v36 = vadd.f32 %v4159_v35, %v8198_v61  ;;  %v4172_v39 = vpop.f32.mrf.mxu1  ;;  %v48_v61 = vld [vmem:[%s8613_s0 + $0xb0] sm:$0xff]  ;;  %v7008_v12 = vld [vmem:[%s8612_s1 + $0xcf8] sm:$0xff] }
 0x160   :  { %4391 = vmatpush.bf16.msra.mxu2 %v6929_v15  ;;  %v1026_v3 = vunpack.c.l.b16 %v48_v61  ;;  %v1027_v7 = vunpack.c.h.b16 %v48_v61  ;;  %v6996_v35 = vld [vmem:[%s8612_s1 + $0xc98] sm:$0xff] }
 0x161   :  { %4404 = vmatpush.bf16.msra.mxu3 %v6937_v16  ;;  %4366 = vmatmul.bf16.vlgmr.msra.gmra.mxu0 %v1078_v23  ;;  %v4173_v42 = vadd.f32 %v4172_v39, %v4160_v36  ;;  %v1085_v16 = vpack.c.b16 %v1029_v8, %v1029_v8  ;;  %v6998_v23 = vld [vmem:[%s8612_s1 + $0xca8] sm:$0xff]  ;;  %v7004_v36 = vld [vmem:[%s8612_s1 + $0xcd8] sm:$0xff]  ;;  %v7023_v8 = vld [vmem:[%s8612_s1 + $0xd70] sm:$0xff] }
 0x162   :  { %4410 = vmatpush.bf16.msrb.mxu0 %v6952_v19  ;;  %4379 = vmatmul.bf16.vlgmr.msra.gmra.mxu1 %v1079_v25  ;;  %v1082_v13 = vpack.c.b16 %v1026_v3, %v1026_v3  ;;  %v1083_v15 = vpack.c.b16 %v1027_v7, %v1027_v7  ;;  %v6999_v19 = vld [vmem:[%s8612_s1 + $0xcb0] sm:$0xff] }
 0x163   :  { %4423 = vmatpush.bf16.msrb.mxu1 %v6960_v20  ;;  %4392 = vmatmul.bf16.vlgmr.msra.gmra.mxu2 %v1080_v24  ;;  %v7007_v20 = vld [vmem:[%s8612_s1 + $0xcf0] sm:$0xff]  ;;  %v7006_v24 = vld [vmem:[%s8612_s1 + $0xce8] sm:$0xff] }
 0x164   :  { %4436 = vmatpush.bf16.msrb.mxu2 %v6968_v21  ;;  %4405 = vmatmul.bf16.vlgmr.msra.gmra.mxu3 %v1081_v26  ;;  %v6982_v21 = vld [vmem:[%s8612_s1 + $0xc28] sm:$0xff]  ;;  %v7015_v7 = vld [vmem:[%s8612_s1 + $0xd30] sm:$0xff] }
 0x165   :  { %4449 = vmatpush.bf16.msrb.mxu3 %v6976_v22  ;;  %v6990_v22 = vld [vmem:[%s8612_s1 + $0xc68] sm:$0xff] }
 0x166   :  { %4411 = vmatpush.bf16.msrb.mxu0 %v6951_v27  ;;  %v4185_v47 = vpop.f32.mrf.mxu2  ;;  %v4161_v50 = vpop.f32.mrf.mxu0  ;;  %v6981_v27 = vld [vmem:[%s8612_s1 + $0xc20] sm:$0xff] }
 0x167   :  { %4424 = vmatpush.bf16.msrb.mxu1 %v6959_v28  ;;  %v4186_v48 = vadd.f32 %v4185_v47, %v4173_v42  ;;  %v4198_v49 = vpop.f32.mrf.mxu3  ;;  %v4174_v54 = vpop.f32.mrf.mxu1  ;;  %v6989_v28 = vld [vmem:[%s8612_s1 + $0xc60] sm:$0xff]  ;;  %v6979_v42 = vld [vmem:[%s8612_s1 + $0xc10] sm:$0xff]  ;;  %v6978_v47 = vld [vmem:[%s8612_s1 + $0xc08] sm:$0xff] }
 0x168   :  { %4437 = vmatpush.bf16.msrb.mxu2 %v6967_v29  ;;  %v7002_v50 = vld [vmem:[%s8612_s1 + $0xcc8] sm:$0xff] }
 0x169   :  { %4450 = vmatpush.bf16.msrb.mxu3 %v6975_v30  ;;  %v8303_v51 = vadd.f32 %v4198_v49, %v4186_v48  ;;  %v6997_v30 = vld [vmem:[%s8612_s1 + $0xca0] sm:$0xff]  ;;  %v6986_v48 = vld [vmem:[%s8612_s1 + $0xc48] sm:$0xff] }
 0x16a   :  { %4412 = vmatpush.bf16.msrb.mxu0 %v6950_v31  ;;  %v7005_v31 = vld [vmem:[%s8612_s1 + $0xce0] sm:$0xff]  ;;  %v6994_v49 = vld [vmem:[%s8612_s1 + $0xc88] sm:$0xff] }
 0x16b   :  { %4425 = vmatpush.bf16.msrb.mxu1 %v6958_v32 }
 0x16c   :  { %4438 = vmatpush.bf16.msrb.mxu2 %v6966_v33  ;;  %v6980_v33 = vld [vmem:[%s8612_s1 + $0xc18] sm:$0xff] }
 0x16d   :  { %4451 = vmatpush.bf16.msrb.mxu3 %v6974_v34  ;;  %v6988_v34 = vld [vmem:[%s8612_s1 + $0xc58] sm:$0xff] }
 0x16e   :  { %4413 = vmatpush.bf16.msrb.mxu0 %v6949_v37  ;;  %v4187_v63 = vpop.f32.mrf.mxu2 }
 0x16f   :  { %4426 = vmatpush.bf16.msrb.mxu1 %v6957_v38  ;;  %v4200_v0 = vpop.f32.mrf.mxu3  ;;  %v7016_v63 = vld [vmem:[%s8612_s1 + $0xd38] sm:$0xff] }
 0x170   :  { %4439 = vmatpush.bf16.msrb.mxu2 %v6965_v40  ;;  %v7024_v0 = vld [vmem:[%s8612_s1 + $0xd78] sm:$0xff] }
 0x171   :  { %4452 = vmatpush.bf16.msrb.mxu3 %v6973_v41 }
 0x172   :  { %4414 = vmatpush.bf16.msrb.mxu0 %v6948_v43  ;;  %v6987_v43 = vld [vmem:[%s8612_s1 + $0xc50] sm:$0xff] }
 0x173   :  { %4427 = vmatpush.bf16.msrb.mxu1 %v6956_v44 }
 0x174   :  { %4440 = vmatpush.bf16.msrb.mxu2 %v6964_v45  ;;  %v6995_v45 = vld [vmem:[%s8612_s1 + $0xc90] sm:$0xff] }
 0x175   :  { %4453 = vmatpush.bf16.msrb.mxu3 %v6972_v46  ;;  %v7003_v46 = vld [vmem:[%s8612_s1 + $0xcd0] sm:$0xff] }
 0x176   :  { %4415 = vmatpush.bf16.msrb.mxu0 %v6947_v52  ;;  %v51_v52 = vld [vmem:[%s8613_s0 + $0xc8] sm:$0xff] }
 0x177   :  { %4428 = vmatpush.bf16.msrb.mxu1 %v6955_v53  ;;  %v1033_v62 = vunpack.c.h.b16 %v51_v52 }
 0x178   :  { %4441 = vmatpush.bf16.msrb.mxu2 %v6963_v55  ;;  %v6977_v55 = vld [vmem:[%s8612_s1 + $0xc00] sm:$0xff] }
 0x179   :  { %4454 = vmatpush.bf16.msrb.mxu3 %v6971_v56  ;;  %v6985_v56 = vld [vmem:[%s8612_s1 + $0xc40] sm:$0xff] }
 0x17a   :  { %4416 = vmatpush.bf16.msrb.mxu0 %v6946_v57 }
 0x17b   :  { %4429 = vmatpush.bf16.msrb.mxu1 %v6954_v58  ;;  %v1032_v58 = vunpack.c.l.b16 %v51_v52  ;;  %v7033_v52 = vld [vmem:[%s8612_s1 + $0xdc0] sm:$0xff] }
 0x17c   :  { %4442 = vmatpush.bf16.msrb.mxu2 %v6962_v59  ;;  %v6993_v59 = vld [vmem:[%s8612_s1 + $0xc80] sm:$0xff] }
 0x17d   :  { %4455 = vmatpush.bf16.msrb.mxu3 %v6970_v60  ;;  %v7001_v60 = vld [vmem:[%s8612_s1 + $0xcc0] sm:$0xff]  ;;  %v1088_v4 = vpack.c.b16 %v1032_v58, %v1032_v58 }
 0x17e   :  { %4417 = vmatpush.bf16.msrb.mxu0 %v6945_v1  ;;  %v4211_v25 = vpop.f32.mrf.mxu0  ;;  %v7032_v1 = vld [vmem:[%s8612_s1 + $0xdb8] sm:$0xff] }
 0x17f   :  { %4430 = vmatpush.bf16.msrb.mxu1 %v6953_v2  ;;  %v4212_v26 = vadd.f32 %v4211_v25, %v8303_v51  ;;  %v4224_v29 = vpop.f32.mrf.mxu1  ;;  %v50_v51 = vld [vmem:[%s8613_s0 + $0xc0] sm:$0xff]  ;;  %v7040_v2 = vld [vmem:[%s8612_s1 + $0xdf8] sm:$0xff] }
 0x180   :  { %4443 = vmatpush.bf16.msrb.mxu2 %v6961_v5  ;;  %v1030_v57 = vunpack.c.l.b16 %v50_v51  ;;  %v1031_v61 = vunpack.c.h.b16 %v50_v51  ;;  %v7028_v25 = vld [vmem:[%s8612_s1 + $0xd98] sm:$0xff]  ;;  %v7025_v51 = vld [vmem:[%s8612_s1 + $0xd80] sm:$0xff] }
 0x181   :  { %4456 = vmatpush.bf16.msrb.mxu3 %v6969_v6  ;;  %4418 = vmatmul.bf16.vlgmr.msrb.gmra.mxu0 %v1082_v13  ;;  %v4225_v32 = vadd.f32 %v4224_v29, %v4212_v26  ;;  %v1089_v6 = vpack.c.b16 %v1033_v62, %v1033_v62  ;;  %v7030_v13 = vld [vmem:[%s8612_s1 + $0xda8] sm:$0xff]  ;;  %v7036_v26 = vld [vmem:[%s8612_s1 + $0xdd8] sm:$0xff] }
 0x182   :  { %4462 = vmatpush.bf16.msra.mxu0 %v6984_v9  ;;  %4431 = vmatmul.bf16.vlgmr.msrb.gmra.mxu1 %v1083_v15  ;;  %v1086_v3 = vpack.c.b16 %v1030_v57, %v1030_v57  ;;  %v1087_v5 = vpack.c.b16 %v1031_v61, %v1031_v61  ;;  %v7031_v9 = vld [vmem:[%s8612_s1 + $0xdb0] sm:$0xff] }
 0x183   :  { %4475 = vmatpush.bf16.msra.mxu1 %v6992_v10  ;;  %4444 = vmatmul.bf16.vlgmr.msrb.gmra.mxu2 %v1084_v14  ;;  %v7039_v10 = vld [vmem:[%s8612_s1 + $0xdf0] sm:$0xff]  ;;  %v7038_v14 = vld [vmem:[%s8612_s1 + $0xde8] sm:$0xff] }
 0x184   :  { %4488 = vmatpush.bf16.msra.mxu2 %v7000_v11  ;;  %4457 = vmatmul.bf16.vlgmr.msrb.gmra.mxu3 %v1085_v16  ;;  %v7014_v11 = vld [vmem:[%s8612_s1 + $0xd28] sm:$0xff] }
 0x185   :  { %4501 = vmatpush.bf16.msra.mxu3 %v7008_v12  ;;  %v7022_v12 = vld [vmem:[%s8612_s1 + $0xd68] sm:$0xff] }
 0x186   :  { %4463 = vmatpush.bf16.msra.mxu0 %v6983_v17  ;;  %v4237_v37 = vpop.f32.mrf.mxu2  ;;  %v4213_v40 = vpop.f32.mrf.mxu0  ;;  %v7013_v17 = vld [vmem:[%s8612_s1 + $0xd20] sm:$0xff] }
 0x187   :  { %4476 = vmatpush.bf16.msra.mxu1 %v6991_v18  ;;  %v4238_v38 = vadd.f32 %v4237_v37, %v4225_v32  ;;  %v4250_v39 = vpop.f32.mrf.mxu3  ;;  %v4226_v44 = vpop.f32.mrf.mxu1  ;;  %v7021_v18 = vld [vmem:[%s8612_s1 + $0xd60] sm:$0xff]  ;;  %v7011_v32 = vld [vmem:[%s8612_s1 + $0xd10] sm:$0xff]  ;;  %v7010_v37 = vld [vmem:[%s8612_s1 + $0xd08] sm:$0xff] }
 0x188   :  { %4489 = vmatpush.bf16.msra.mxu2 %v6999_v19  ;;  %v7026_v40 = vld [vmem:[%s8612_s1 + $0xd88] sm:$0xff] }
 0x189   :  { %4502 = vmatpush.bf16.msra.mxu3 %v7007_v20  ;;  %v8408_v41 = vadd.f32 %v4250_v39, %v4238_v38  ;;  %v7029_v20 = vld [vmem:[%s8612_s1 + $0xda0] sm:$0xff]  ;;  %v7018_v38 = vld [vmem:[%s8612_s1 + $0xd48] sm:$0xff]  ;;  %v52_v39 = vld [vmem:[%s8613_s0 + $0xd0] sm:$0xff] }
 0x18a   :  { %4464 = vmatpush.bf16.msra.mxu0 %v6982_v21  ;;  %v7037_v21 = vld [vmem:[%s8612_s1 + $0xde0] sm:$0xff] }
 0x18b   :  { %4477 = vmatpush.bf16.msra.mxu1 %v6990_v22 }
 0x18c   :  { %4490 = vmatpush.bf16.msra.mxu2 %v6998_v23  ;;  %v7012_v23 = vld [vmem:[%s8612_s1 + $0xd18] sm:$0xff] }
 0x18d   :  { %4503 = vmatpush.bf16.msra.mxu3 %v7006_v24  ;;  %v7020_v24 = vld [vmem:[%s8612_s1 + $0xd58] sm:$0xff] }
 0x18e   :  { %4465 = vmatpush.bf16.msra.mxu0 %v6981_v27  ;;  %v4239_v53 = vpop.f32.mrf.mxu2 }
 0x18f   :  { %4478 = vmatpush.bf16.msra.mxu1 %v6989_v28  ;;  %v4252_v54 = vpop.f32.mrf.mxu3 }
 0x190   :  { %4491 = vmatpush.bf16.msra.mxu2 %v6997_v30 }
 0x191   :  { %4504 = vmatpush.bf16.msra.mxu3 %v7005_v31 }
 0x192   :  { %4466 = vmatpush.bf16.msra.mxu0 %v6980_v33  ;;  %v7019_v33 = vld [vmem:[%s8612_s1 + $0xd50] sm:$0xff] }
 0x193   :  { %4479 = vmatpush.bf16.msra.mxu1 %v6988_v34 }
 0x194   :  { %4492 = vmatpush.bf16.msra.mxu2 %v6996_v35  ;;  %v7027_v35 = vld [vmem:[%s8612_s1 + $0xd90] sm:$0xff] }
 0x195   :  { %4505 = vmatpush.bf16.msra.mxu3 %v7004_v36  ;;  %v7035_v36 = vld [vmem:[%s8612_s1 + $0xdd0] sm:$0xff] }
 0x196   :  { %4467 = vmatpush.bf16.msra.mxu0 %v6979_v42  ;;  %v53_v42 = vld [vmem:[%s8613_s0 + $0xd8] sm:$0xff] }
 0x197   :  { %4480 = vmatpush.bf16.msra.mxu1 %v6987_v43 }
 0x198   :  { %4493 = vmatpush.bf16.msra.mxu2 %v6995_v45  ;;  %v1034_v45 = vunpack.c.l.b16 %v52_v39 }
 0x199   :  { %4506 = vmatpush.bf16.msra.mxu3 %v7003_v46  ;;  %v1035_v46 = vunpack.c.h.b16 %v52_v39 }
 0x19a   :  { %4468 = vmatpush.bf16.msra.mxu0 %v6978_v47  ;;  %v7009_v47 = vld [vmem:[%s8612_s1 + $0xd00] sm:$0xff]  ;;  %v1090_v53 = vpack.c.b16 %v1034_v45, %v1034_v45  ;;  %v7055_v45 = vld [vmem:[%s8617_s5 + $0x30] sm:$0xff] }
 0x19b   :  { %4481 = vmatpush.bf16.msra.mxu1 %v6986_v48  ;;  %v7017_v48 = vld [vmem:[%s8612_s1 + $0xd40] sm:$0xff]  ;;  %v1091_v54 = vpack.c.b16 %v1035_v46, %v1035_v46 }
 0x19c   :  { %4494 = vmatpush.bf16.msra.mxu2 %v6994_v49  ;;  %v1036_v49 = vunpack.c.l.b16 %v53_v42 }
 0x19d   :  { %4507 = vmatpush.bf16.msra.mxu3 %v7002_v50  ;;  %v1037_v50 = vunpack.c.h.b16 %v53_v42  ;;  %v7056_v42 = vld [vmem:[%s8617_s5 + $0x38] sm:$0xff] }
 0x19e   :  { %4469 = vmatpush.bf16.msra.mxu0 %v6977_v55  ;;  %v4263_v15 = vpop.f32.mrf.mxu0  ;;  %v1092_v55 = vpack.c.b16 %v1036_v49, %v1036_v49 }
 0x19f   :  { %4482 = vmatpush.bf16.msra.mxu1 %v6985_v56  ;;  %v4264_v16 = vadd.f32 %v4263_v15, %v8408_v41  ;;  %v4276_v19 = vpop.f32.mrf.mxu1  ;;  %v7034_v41 = vld [vmem:[%s8612_s1 + $0xdc8] sm:$0xff]  ;;  %v1093_v56 = vpack.c.b16 %v1037_v50, %v1037_v50  ;;  %v7053_v50 = vld [vmem:[%s8617_s5 + $0x20] sm:$0xff] }
 0x1a0   :  { %4495 = vmatpush.bf16.msra.mxu2 %v6993_v59 }
 0x1a1   :  { %4508 = vmatpush.bf16.msra.mxu3 %v7001_v60  ;;  %4470 = vmatmul.bf16.vlgmr.msra.gmra.mxu0 %v1086_v3  ;;  %v4277_v22 = vadd.f32 %v4276_v19, %v4264_v16 }
 0x1a2   :  { %4514 = vmatpush.bf16.msrb.mxu0 %v7016_v63  ;;  %4483 = vmatmul.bf16.vlgmr.msra.gmra.mxu1 %v1087_v5 }
 0x1a3   :  { %4527 = vmatpush.bf16.msrb.mxu1 %v7024_v0  ;;  %4496 = vmatmul.bf16.vlgmr.msra.gmra.mxu2 %v1088_v4 }
 0x1a4   :  { %4540 = vmatpush.bf16.msrb.mxu2 %v7032_v1  ;;  %4509 = vmatmul.bf16.vlgmr.msra.gmra.mxu3 %v1089_v6 }
 0x1a5   :  { %4553 = vmatpush.bf16.msrb.mxu3 %v7040_v2 }
 0x1a6   :  { %4515 = vmatpush.bf16.msrb.mxu0 %v7015_v7  ;;  %v4289_v27 = vpop.f32.mrf.mxu2  ;;  %v4265_v30 = vpop.f32.mrf.mxu0 }
 0x1a7   :  { %4528 = vmatpush.bf16.msrb.mxu1 %v7023_v8  ;;  %v4290_v28 = vadd.f32 %v4289_v27, %v4277_v22  ;;  %v4302_v29 = vpop.f32.mrf.mxu3  ;;  %v4278_v34 = vpop.f32.mrf.mxu1 }
 0x1a8   :  { %4541 = vmatpush.bf16.msrb.mxu2 %v7031_v9 }
 0x1a9   :  { %4554 = vmatpush.bf16.msrb.mxu3 %v7039_v10  ;;  %v4303_v31 = vadd.f32 %v4302_v29, %v4290_v28  ;;  %v7045_v28 = vld [vmem:[%s8616_s3 + $0x20] sm:$0xff]  ;;  %v7044_v29 = vld [vmem:[%s8616_s3 + $0x18] sm:$0xff] }
 0x1aa   :  { %4516 = vmatpush.bf16.msrb.mxu0 %v7014_v11 }
 0x1ab   :  { %4529 = vmatpush.bf16.msrb.mxu1 %v7022_v12 }
 0x1ac   :  { %4542 = vmatpush.bf16.msrb.mxu2 %v7030_v13 }
 0x1ad   :  { %4555 = vmatpush.bf16.msrb.mxu3 %v7038_v14 }
 0x1ae   :  { %4517 = vmatpush.bf16.msrb.mxu0 %v7013_v17  ;;  %v4291_v43 = vpop.f32.mrf.mxu2 }
 0x1af   :  { %4530 = vmatpush.bf16.msrb.mxu1 %v7021_v18  ;;  %v4304_v44 = vpop.f32.mrf.mxu3 }
 0x1b0   :  { %4543 = vmatpush.bf16.msrb.mxu2 %v7029_v20 }
 0x1b1   :  { %4556 = vmatpush.bf16.msrb.mxu3 %v7037_v21  ;;  %v7048_v21 = vld [vmem:[%s8616_s3 + $0x38] sm:$0xff] }
 0x1b2   :  { %4518 = vmatpush.bf16.msrb.mxu0 %v7012_v23 }
 0x1b3   :  { %4531 = vmatpush.bf16.msrb.mxu1 %v7020_v24  ;;  %v7047_v24 = vld [vmem:[%s8616_s3 + $0x30] sm:$0xff] }
 0x1b4   :  { %4544 = vmatpush.bf16.msrb.mxu2 %v7028_v25  ;;  %v7046_v25 = vld [vmem:[%s8616_s3 + $0x28] sm:$0xff] }
 0x1b5   :  { %4557 = vmatpush.bf16.msrb.mxu3 %v7036_v26 }
 0x1b6   :  { %4519 = vmatpush.bf16.msrb.mxu0 %v7011_v32 }
 0x1b7   :  { %4532 = vmatpush.bf16.msrb.mxu1 %v7019_v33  ;;  %v7042_v33 = vld [vmem:[%s8616_s3 + $0x8] sm:$0xff] }
 0x1b8   :  { %4545 = vmatpush.bf16.msrb.mxu2 %v7027_v35 }
 0x1b9   :  { %4558 = vmatpush.bf16.msrb.mxu3 %v7035_v36 }
 0x1ba   :  { %4520 = vmatpush.bf16.msrb.mxu0 %v7010_v37 }
 0x1bb   :  { %4533 = vmatpush.bf16.msrb.mxu1 %v7018_v38  ;;  %v7041_v38 = vld [vmem:[%s8616_s3] sm:$0xff] }
 0x1bc   :  { %4546 = vmatpush.bf16.msrb.mxu2 %v7026_v40 }
 0x1bd   :  { %4559 = vmatpush.bf16.msrb.mxu3 %v7034_v41 }
 0x1be   :  { %4521 = vmatpush.bf16.msrb.mxu0 %v7009_v47  ;;  %v4315_v57 = vpop.f32.mrf.mxu0 }
 0x1bf   :  { %4534 = vmatpush.bf16.msrb.mxu1 %v7017_v48  ;;  %v4316_v58 = vadd.f32 %v4315_v57, %v4303_v31  ;;  %v4328_v59 = vpop.f32.mrf.mxu1  ;;  %v7043_v31 = vld [vmem:[%s8616_s3 + $0x10] sm:$0xff]  ;;  %v7054_v48 = vld [vmem:[%s8617_s5 + $0x28] sm:$0xff] }
 0x1c0   :  { %4547 = vmatpush.bf16.msrb.mxu2 %v7025_v51  ;;  %v7051_v57 = vld [vmem:[%s8617_s5 + $0x10] sm:$0xff] }
 0x1c1   :  { %4560 = vmatpush.bf16.msrb.mxu3 %v7033_v52  ;;  %4522 = vmatmul.bf16.vlgmr.msrb.gmra.mxu0 %v1090_v53  ;;  %v4329_v60 = vadd.f32 %v4328_v59, %v4316_v58  ;;  %v7052_v52 = vld [vmem:[%s8617_s5 + $0x18] sm:$0xff] }
 0x1c2   :  { %4535 = vmatmul.bf16.vlgmr.msrb.gmra.mxu1 %v1091_v54  ;;  %4636 = vmatpush.bf16.msra.mxu0 %v7048_v21 }
 0x1c3   :  { %4548 = vmatmul.bf16.vlgmr.msrb.gmra.mxu2 %v1092_v55  ;;  %4719 = vmatpush.bf16.msra.mxu1 %v7056_v42 }
 0x1c4   :  { %4561 = vmatmul.bf16.vlgmr.msrb.gmra.mxu3 %v1093_v56 }
 0x1c6   :  { %v4341_v61 = vpop.f32.mrf.mxu2  ;;  %v4317_v0 = vpop.f32.mrf.mxu0  ;;  %4637 = vmatpush.bf16.msra.mxu0 %v7047_v24 }
 0x1c7   :  { %v4342_v62 = vadd.f32 %v4341_v61, %v4329_v60  ;;  %v4354_v63 = vpop.f32.mrf.mxu3  ;;  %v4330_v2 = vpop.f32.mrf.mxu1  ;;  %4720 = vmatpush.bf16.msra.mxu1 %v7055_v45 }
 0x1c9   :  { %v4355_v1 = vadd.f32 %v4354_v63, %v4342_v62 }
 0x1ca   :  { %4638 = vmatpush.bf16.msra.mxu0 %v7046_v25 }
 0x1cb   :  { %4721 = vmatpush.bf16.msra.mxu1 %v7054_v48 }
 0x1ce   :  { %v4343_v3 = vpop.f32.mrf.mxu2  ;;  %4639 = vmatpush.bf16.msra.mxu0 %v7045_v28 }
 0x1cf   :  { %v4356_v4 = vpop.f32.mrf.mxu3  ;;  %4722 = vmatpush.bf16.msra.mxu1 %v7053_v50 }
 0x1d2   :  { %4640 = vmatpush.bf16.msra.mxu0 %v7044_v29 }
 0x1d3   :  { %4723 = vmatpush.bf16.msra.mxu1 %v7052_v52 }
 0x1d6   :  { %4641 = vmatpush.bf16.msra.mxu0 %v7043_v31 }
 0x1d7   :  { %4724 = vmatpush.bf16.msra.mxu1 %v7051_v57 }
 0x1da   :  { %4642 = vmatpush.bf16.msra.mxu0 %v7042_v33 }
 0x1de   :  { %v4367_v5 = vpop.f32.mrf.mxu0  ;;  %4643 = vmatpush.bf16.msra.mxu0 %v7041_v38 }
 0x1df   :  { %v4368_v6 = vadd.f32 %v4367_v5, %v4355_v1  ;;  %v4380_v7 = vpop.f32.mrf.mxu1  ;;  %v7050_v5 = vld [vmem:[%s8617_s5 + $0x8] sm:$0xff] }
 0x1e0   :  { %4725 = vmatpush.bf16.msra.mxu1 %v7050_v5 }
 0x1e1   :  { %v4381_v8 = vadd.f32 %v4380_v7, %v4368_v6  ;;  %v7049_v6 = vld [vmem:[%s8617_s5] sm:$0xff] }
 0x1e2   :  { %v7058_v7 = vld [vmem:[%s8615_s4] ss:$0 sm:$0xff] }
 0x1e4   :  { %4726 = vmatpush.bf16.msra.mxu1 %v7049_v6 }
 0x1e6   :  { %v4393_v9 = vpop.f32.mrf.mxu2  ;;  %v4369_v12 = vpop.f32.mrf.mxu0 }
 0x1e7   :  { %v4394_v10 = vadd.f32 %v4393_v9, %v4381_v8  ;;  %v4406_v11 = vpop.f32.mrf.mxu3  ;;  %v4382_v14 = vpop.f32.mrf.mxu1 }
 0x1e9   :  { %v4407_v13 = vadd.f32 %v4406_v11, %v4394_v10 }
 0x1ee   :  { %v4395_v15 = vpop.f32.mrf.mxu2 }
 0x1ef   :  { %v4408_v16 = vpop.f32.mrf.mxu3 }
 0x1fe   :  { %v4419_v17 = vpop.f32.mrf.mxu0 }
 0x1ff   :  { %v4432_v18 = vpop.f32.mrf.mxu1  ;;  %v4420_v35 = vadd.f32 %v4419_v17, %v4407_v13  ;;  %v7059_v13 = vld [vmem:[%s8618_s6] ss:$0 sm:$0xff] }
 0x201   :  { %v4433_v40 = vadd.f32 %v4432_v18, %v4420_v35 }
 0x206   :  { %v4445_v19 = vpop.f32.mrf.mxu2  ;;  %v4421_v22 = vpop.f32.mrf.mxu0 }
 0x207   :  { %v4458_v20 = vpop.f32.mrf.mxu3  ;;  %v4434_v23 = vpop.f32.mrf.mxu1  ;;  %v4446_v41 = vadd.f32 %v4445_v19, %v4433_v40 }
 0x209   :  { %v4459_v46 = vadd.f32 %v4458_v20, %v4446_v41 }
 0x20e   :  { %v4447_v26 = vpop.f32.mrf.mxu2 }
 0x20f   :  { %v4460_v27 = vpop.f32.mrf.mxu3 }
 0x21e   :  { %v4471_v30 = vpop.f32.mrf.mxu0 }
 0x21f   :  { %v4484_v32 = vpop.f32.mrf.mxu1  ;;  %v4472_v47 = vadd.f32 %v4471_v30, %v4459_v46 }
 0x221   :  { %v4485_v49 = vadd.f32 %v4484_v32, %v4472_v47 }
 0x226   :  { %v4497_v34 = vpop.f32.mrf.mxu2  ;;  %v4473_v37 = vpop.f32.mrf.mxu0 }
 0x227   :  { %v4510_v36 = vpop.f32.mrf.mxu3  ;;  %v4486_v39 = vpop.f32.mrf.mxu1  ;;  %v4498_v51 = vadd.f32 %v4497_v34, %v4485_v49 }
 0x229   :  { %v4511_v53 = vadd.f32 %v4510_v36, %v4498_v51 }
 0x22e   :  { %v4499_v43 = vpop.f32.mrf.mxu2 }
 0x22f   :  { %v4512_v44 = vpop.f32.mrf.mxu3 }
 0x23e   :  { %v4523_v54 = vpop.f32.mrf.mxu0 }
 0x23f   :  { %v4536_v55 = vpop.f32.mrf.mxu1  ;;  %v4524_v56 = vadd.f32 %v4523_v54, %v4511_v53 }
 0x241   :  { %v4537_v58 = vadd.f32 %v4536_v55, %v4524_v56 }
 0x246   :  { %v4549_v59 = vpop.f32.mrf.mxu2  ;;  %v4525_v62 = vpop.f32.mrf.mxu0 }
 0x247   :  { %v4562_v60 = vpop.f32.mrf.mxu3  ;;  %v4550_v61 = vadd.f32 %v4549_v59, %v4537_v58  ;;  %v4538_v63 = vpop.f32.mrf.mxu1 }
 0x249   :  { %v4563_v0 = vadd.f32 %v4562_v60, %v4550_v61 }
 0x24b   :  { %v4566_v1 = vmax.f32 %v4563_v0, 0.0 }
 0x24d   :  { %v4567_v2 = vpack.c.bf16 %v4566_v1, %v4566_v1 }
 0x24e   :  { %v4551_v3 = vpop.f32.mrf.mxu2 }
 0x24f   :  { %v4564_v4 = vpop.f32.mrf.mxu3  ;;  %4644 = vmatmul.bf16.vlgmr.msra.gmra.mxu0 %v4567_v2 }
 0x2cc   :  { %v4645_v8 = vpop.f32.mrf.mxu0 }
 0x2cd   :  { %v4646_v9 = vadd.f32 %v7058_v7, %v4645_v8 }
 0x2cf   :  { %v4649_v10 = vmax.f32 %v4646_v9, 0.0 }
 0x2d1   :  { %v4650_v11 = vpack.c.bf16 %v4649_v10, %v4649_v10 }
 0x2d3   :  { %4727 = vmatmul.bf16.vlgmr.msra.gmra.mxu1 %v4650_v11 }
 0x2d4   :  { %v4647_v12 = vpop.f32.mrf.mxu0 }
 0x350   :  { %v4728_v14 = vpop.f32.mrf.mxu1 }
 0x351   :  { %v4729_v15 = vadd.f32 %v7059_v13, %v4728_v14 }
 0x353   :  { %4732 = vst [vmem:[%s8619_s7] sm:$0xff] %v4729_v15 }
 0x358   :  { %v4730_v16 = vpop.f32.mrf.mxu1 }

</bundles_post_ra>
